<compile_context>
chip_gen: v5e
topology: v5e:2x2
jax: 0.10.0
libtpu: 0.0.40
codegen_flags: <defaults>
</compile_context>

<pallas_src>
import functools

import jax
import jax.numpy as jnp
from jax import lax
from jax.experimental import pallas as pl
from jax.experimental.pallas import tpu as pltpu


def bottleneck_kernel(x_ref, w1_ref, b1_ref, w2_ref, b2_ref, w3_ref, b3_ref,
                      mask_ref, out_ref, pad_ref, *, H, W, PAD):
    M, _ = x_ref.shape
    planes = w1_ref.shape[1]
    CW = pad_ref.shape[1]                      # 9 * planes

    x_f32 = x_ref[...]                         # (M, Cin) f32, kept for residual

    # ---- conv1 (1x1, BN1 scale pre-folded into w1) + bias + ReLU ----
    o1 = jnp.dot(x_f32.astype(jnp.bfloat16), w1_ref[...],
                 preferred_element_type=jnp.float32)
    o1 = jnp.maximum(o1 + b1_ref[...], 0.0)    # (M, planes) f32

    # ---- conv2 (3x3, stride=1, pad=1, BN2 scale pre-folded) ----
    # Channel contraction for all 9 taps in ONE MXU matmul; the spatial part is
    # 9 shifted row-slices of the result, masked (VPU) and accumulated in f32.
    p_all = jnp.dot(o1.astype(jnp.bfloat16), w2_ref[...],
                    preferred_element_type=jnp.float32)      # (M, 9*planes)

    # Row-padded 2-D staging buffer so shifted reads stay in-bounds.
    # PAD is a multiple of 8, so the big interior store is sublane-aligned.
    pad_ref[0:PAD, :] = jnp.zeros((PAD, CW), jnp.float32)
    pad_ref[PAD + M:PAD + M + PAD, :] = jnp.zeros((PAD, CW), jnp.float32)
    pad_ref[PAD:PAD + M, :] = p_all

    acc = jnp.zeros((M, planes), jnp.float32)
    for kh in range(3):
        for kw in range(3):
            t = kh * 3 + kw
            delta = (kh - 1) * W + (kw - 1)    # flat-index offset of this tap
            r0 = PAD + delta
            c0 = t * planes
            tap = pad_ref[r0:r0 + M, c0:c0 + planes]          # (M, planes) f32
            if kh == 1 and kw == 1:
                acc = acc + tap                # centre tap is always valid
            else:
                # mask handles image borders AND image-to-image boundaries in
                # the flattened batch (precomputed in the wrapper).
                acc = acc + tap * mask_ref[:, c0:c0 + planes]
    o2 = jnp.maximum(acc + b2_ref[...], 0.0)   # (M, planes) f32

    # ---- conv3 (1x1, BN3 scale pre-folded) + bias ----
    o3 = jnp.dot(o2.astype(jnp.bfloat16), w3_ref[...],
                 preferred_element_type=jnp.float32)
    o3 = o3 + b3_ref[...]                      # (M, Cout) f32

    # ---- identity residual (downsample=None, Cin == planes*4) + ReLU ----
    out_ref[...] = jnp.maximum(o3 + x_f32, 0.0)


def bottleneck_pallas(x_nhwc, folded_params):
    (w1f, b1, w2f, b2, w3f, b3) = folded_params
    N, H, W, Cin = x_nhwc.shape
    planes = w1f.shape[1]
    Cout = w3f.shape[1]
    # Identity residual only valid for this Bottleneck config (fail loudly).
    assert Cin == Cout, "identity residual requires inplanes == planes * expansion"

    M = N * H * W
    PAD = ((W + 1 + 7) // 8) * 8               # >= W+1 halo rows, 8-aligned

    # Flatten NHWC -> (M, Cin) in HBM (free bitcast); kernel stays 2-D.
    x2d = x_nhwc.reshape(M, Cin)

    # Static per-tap validity masks, broadcast over `planes` lanes and packed
    # as (M, 9*planes) so the kernel's tap slices line up column-for-column.
    m = jnp.arange(M, dtype=jnp.int32)
    h_idx = (m // W) % H
    w_idx = m % W
    masks = []
    for kh in range(3):
        for kw in range(3):
            ok_h = (h_idx + (kh - 1) >= 0) & (h_idx + (kh - 1) <= H - 1)
            ok_w = (w_idx + (kw - 1) >= 0) & (w_idx + (kw - 1) <= W - 1)
            ok = (ok_h & ok_w).astype(jnp.float32)
            masks.append(jnp.broadcast_to(ok[:, None], (M, planes)))
    tap_mask = jnp.concatenate(masks, axis=1)  # (M, 9*planes) f32

    kernel = functools.partial(bottleneck_kernel, H=H, W=W, PAD=PAD)
    out2d = pl.pallas_call(
        kernel,
        out_shape=jax.ShapeDtypeStruct((M, Cout), jnp.float32),
        scratch_shapes=[pltpu.VMEM((M + 2 * PAD, 9 * planes), jnp.float32)],
    )(x2d, w1f, b1, w2f, b2, w3f, b3, tap_mask)

    # 2-D lane-contiguous kernel output -> NHWC in the wrapper (free in HBM).
    return out2d.reshape(N, H, W, Cout)


def fold_bn(gamma, beta, mean, var, eps=1e-5):
    scale = gamma / jnp.sqrt(var + eps)
    bias = beta - mean * scale
    # keep 2-D (1, C) so they broadcast cleanly against (M, C) inside the kernel
    return scale.reshape(1, -1), bias.reshape(1, -1)


def fold_params(params):
    """Fold eval-mode BN scales into conv weights; cast matmul weights to bf16.

    w2 (3,3,ci,co) HWIO is repacked to (ci, 9*co): column block t = kh*3+kw
    holds the BN2-scaled w2[kh, kw, :, :], matching the kernel's tap ordering.
    Biases stay f32 (elementwise path).
    """
    (w1, s1, b1, w2, s2, b2, w3, s3, b3) = params
    w1f = (w1 * s1).astype(jnp.bfloat16)                         # (Cin, planes)
    w2s = w2 * s2.reshape(1, 1, 1, -1)                           # (3,3,ci,co)
    ci, co = w2.shape[2], w2.shape[3]
    w2f = jnp.transpose(w2s, (2, 0, 1, 3)).reshape(ci, 9 * co).astype(jnp.bfloat16)
    w3f = (w3 * s3).astype(jnp.bfloat16)                         # (planes, Cout)
    return (w1f, b1, w2f, b2, w3f, b3)


def ref_bottleneck(x, params):
    # pure-JAX reference (lax convs, f32, unfolded params) for correctness check
    (w1, s1, b1, w2, s2, b2, w3, s3, b3) = params
    dn = ('NHWC', 'HWIO', 'NHWC')
    o = lax.conv_general_dilated(x, w1.reshape(1, 1, *w1.shape), (1, 1),
                                 'VALID', dimension_numbers=dn)
    o = jnp.maximum(o * s1 + b1, 0.0)
    o = lax.conv_general_dilated(o, w2, (1, 1), ((1, 1), (1, 1)),
                                 dimension_numbers=dn)
    o = jnp.maximum(o * s2 + b2, 0.0)
    o = lax.conv_general_dilated(o, w3.reshape(1, 1, *w3.shape), (1, 1),
                                 'VALID', dimension_numbers=dn)
    o = o * s3 + b3
    return jnp.maximum(o + x, 0.0)


if __name__ == "__main__":
    # small config: inplanes = 16, planes = 4 (expansion 4 -> out channels 16)
    N, Cin, H, W = 2, 16, 12, 10
    planes = 4
    Cout = planes * 4  # == Cin, so identity residual is valid

    key = jax.random.PRNGKey(0)
    ks = jax.random.split(key, 8)

    # deterministic synthetic parameters (1x1 conv weights stored matmul-style)
    w1 = jax.random.normal(ks[0], (Cin, planes), jnp.float32) * 0.1
    w2 = jax.random.normal(ks[1], (3, 3, planes, planes), jnp.float32) * 0.1
    w3 = jax.random.normal(ks[2], (planes, Cout), jnp.float32) * 0.1

    def bn_params(k, c):
        k1, k2, k3, k4 = jax.random.split(k, 4)
        gamma = jax.random.uniform(k1, (c,), jnp.float32, 0.5, 1.5)
        beta = jax.random.normal(k2, (c,), jnp.float32) * 0.1
        mean = jax.random.normal(k3, (c,), jnp.float32) * 0.1
        var = jax.random.uniform(k4, (c,), jnp.float32, 0.5, 1.5)
        return fold_bn(gamma, beta, mean, var)

    s1, b1 = bn_params(ks[3], planes)
    s2, b2 = bn_params(ks[4], planes)
    s3, b3 = bn_params(ks[5], Cout)

    params = (w1, s1, b1, w2, s2, b2, w3, s3, b3)
    folded = fold_params(params)

    # input in PyTorch NCHW, transposed to NHWC for the kernel
    x_nchw = jax.random.normal(ks[6], (N, Cin, H, W), jnp.float32)
    x_nhwc = jnp.transpose(x_nchw, (0, 2, 3, 1))

    out = bottleneck_pallas(x_nhwc, folded)
    out = jax.block_until_ready(out)

    ref = ref_bottleneck(x_nhwc, params)
    # tolerance loosened for bf16 MXU operands (f32 accumulation / elementwise)
    if not jnp.allclose(out, ref, atol=3e-2, rtol=3e-2):
        raise AssertionError("Pallas Bottleneck output mismatch vs reference")

    print("KERNEL_OK")
</pallas_src>

<mosaic_0001>
module attributes {stable_mosaic.version = 11 : i64} {
  func.func @bottleneck_kernel(%arg0: memref<240x16xf32, #tpu.memory_space<vmem>>, %arg1: memref<16x4xbf16, #tpu.memory_space<vmem>>, %arg2: memref<1x4xf32, #tpu.memory_space<vmem>>, %arg3: memref<4x36xbf16, #tpu.memory_space<vmem>>, %arg4: memref<1x4xf32, #tpu.memory_space<vmem>>, %arg5: memref<4x16xbf16, #tpu.memory_space<vmem>>, %arg6: memref<1x16xf32, #tpu.memory_space<vmem>>, %arg7: memref<240x36xf32, #tpu.memory_space<vmem>>, %arg8: memref<240x16xf32, #tpu.memory_space<vmem>>, %arg9: memref<272x36xf32, #tpu.memory_space<vmem>>) attributes {dimension_semantics = [], scalar_prefetch = 0 : i64, scratch_operands = 1 : i64, tpu.core_type = #tpu.core_type<tc>} {
    %c0 = arith.constant 0 : index
    %c0_0 = arith.constant 0 : index
    %0 = vector.load %arg0[%c0, %c0_0] : memref<240x16xf32, #tpu.memory_space<vmem>>, vector<240x16xf32>
    %1 = arith.truncf %0 : vector<240x16xf32> to vector<240x16xbf16>
    %c0_1 = arith.constant 0 : index
    %c0_2 = arith.constant 0 : index
    %2 = vector.load %arg1[%c0_1, %c0_2] : memref<16x4xbf16, #tpu.memory_space<vmem>>, vector<16x4xbf16>
    %cst = arith.constant dense<0.000000e+00> : vector<240x4xf32>
    %3 = tpu.matmul %1, %2, %cst {dimension_numbers = #tpu.dot_dimension_numbers<[1], [0], [0], [1], [0, 0, 1, 1], [], []>} : vector<240x16xbf16>, vector<16x4xbf16>, vector<240x4xf32> -> vector<240x4xf32>
    %c0_3 = arith.constant 0 : index
    %c0_4 = arith.constant 0 : index
    %4 = vector.load %arg2[%c0_3, %c0_4] : memref<1x4xf32, #tpu.memory_space<vmem>>, vector<1x4xf32>
    %5 = vector.broadcast %4 : vector<1x4xf32> to vector<240x4xf32>
    %6 = arith.addf %3, %5 : vector<240x4xf32>
    %cst_5 = arith.constant 0.000000e+00 : f32
    %7 = vector.broadcast %cst_5 : f32 to vector<240x4xf32>
    %8 = arith.maximumf %6, %7 : vector<240x4xf32>
    %9 = arith.truncf %8 : vector<240x4xf32> to vector<240x4xbf16>
    %c0_6 = arith.constant 0 : index
    %c0_7 = arith.constant 0 : index
    %10 = vector.load %arg3[%c0_6, %c0_7] : memref<4x36xbf16, #tpu.memory_space<vmem>>, vector<4x36xbf16>
    %cst_8 = arith.constant dense<0.000000e+00> : vector<240x36xf32>
    %11 = tpu.matmul %9, %10, %cst_8 {dimension_numbers = #tpu.dot_dimension_numbers<[1], [0], [0], [1], [0, 0, 1, 1], [], []>} : vector<240x4xbf16>, vector<4x36xbf16>, vector<240x36xf32> -> vector<240x36xf32>
    %cst_9 = arith.constant 0.000000e+00 : f32
    %12 = vector.broadcast %cst_9 : f32 to vector<16x36xf32>
    %c0_10 = arith.constant 0 : index
    %c0_11 = arith.constant 0 : index
    %13 = vector.load %arg9[%c0_10, %c0_11] : memref<272x36xf32, #tpu.memory_space<vmem>>, vector<16x36xf32>
    tpu.vector_store %arg9[%c0_10, %c0_11], %12 {strides = array<i32>} : memref<272x36xf32, #tpu.memory_space<vmem>>, vector<16x36xf32>,
    %cst_12 = arith.constant 0.000000e+00 : f32
    %14 = vector.broadcast %cst_12 : f32 to vector<16x36xf32>
    %c256 = arith.constant 256 : index
    %c0_13 = arith.constant 0 : index
    %15 = vector.load %arg9[%c256, %c0_13] : memref<272x36xf32, #tpu.memory_space<vmem>>, vector<16x36xf32>
    tpu.vector_store %arg9[%c256, %c0_13], %14 {strides = array<i32>} : memref<272x36xf32, #tpu.memory_space<vmem>>, vector<16x36xf32>,
    %c16 = arith.constant 16 : index
    %c0_14 = arith.constant 0 : index
    %16 = vector.load %arg9[%c16, %c0_14] : memref<272x36xf32, #tpu.memory_space<vmem>>, vector<240x36xf32>
    tpu.vector_store %arg9[%c16, %c0_14], %11 {strides = array<i32>} : memref<272x36xf32, #tpu.memory_space<vmem>>, vector<240x36xf32>,
    %cst_15 = arith.constant 0.000000e+00 : f32
    %17 = vector.broadcast %cst_15 : f32 to vector<240x4xf32>
    %c5 = arith.constant 5 : index
    %c0_16 = arith.constant 0 : index
    %18 = vector.load %arg9[%c5, %c0_16] : memref<272x36xf32, #tpu.memory_space<vmem>>, vector<240x4xf32>
    %c0_17 = arith.constant 0 : index
    %c0_18 = arith.constant 0 : index
    %19 = vector.load %arg7[%c0_17, %c0_18] : memref<240x36xf32, #tpu.memory_space<vmem>>, vector<240x4xf32>
    %20 = arith.mulf %18, %19 : vector<240x4xf32>
    %21 = arith.addf %17, %20 : vector<240x4xf32>
    %c6 = arith.constant 6 : index
    %c4 = arith.constant 4 : index
    %22 = vector.load %arg9[%c6, %c4] : memref<272x36xf32, #tpu.memory_space<vmem>>, vector<240x4xf32>
    %c0_19 = arith.constant 0 : index
    %c4_20 = arith.constant 4 : index
    %23 = vector.load %arg7[%c0_19, %c4_20] : memref<240x36xf32, #tpu.memory_space<vmem>>, vector<240x4xf32>
    %24 = arith.mulf %22, %23 : vector<240x4xf32>
    %25 = arith.addf %21, %24 : vector<240x4xf32>
    %c7 = arith.constant 7 : index
    %c8 = arith.constant 8 : index
    %26 = vector.load %arg9[%c7, %c8] : memref<272x36xf32, #tpu.memory_space<vmem>>, vector<240x4xf32>
    %c0_21 = arith.constant 0 : index
    %c8_22 = arith.constant 8 : index
    %27 = vector.load %arg7[%c0_21, %c8_22] : memref<240x36xf32, #tpu.memory_space<vmem>>, vector<240x4xf32>
    %28 = arith.mulf %26, %27 : vector<240x4xf32>
    %29 = arith.addf %25, %28 : vector<240x4xf32>
    %c15 = arith.constant 15 : index
    %c12 = arith.constant 12 : index
    %30 = vector.load %arg9[%c15, %c12] : memref<272x36xf32, #tpu.memory_space<vmem>>, vector<240x4xf32>
    %c0_23 = arith.constant 0 : index
    %c12_24 = arith.constant 12 : index
    %31 = vector.load %arg7[%c0_23, %c12_24] : memref<240x36xf32, #tpu.memory_space<vmem>>, vector<240x4xf32>
    %32 = arith.mulf %30, %31 : vector<240x4xf32>
    %33 = arith.addf %29, %32 : vector<240x4xf32>
    %c16_25 = arith.constant 16 : index
    %c16_26 = arith.constant 16 : index
    %34 = vector.load %arg9[%c16_25, %c16_26] : memref<272x36xf32, #tpu.memory_space<vmem>>, vector<240x4xf32>
    %35 = arith.addf %33, %34 : vector<240x4xf32>
    %c17 = arith.constant 17 : index
    %c20 = arith.constant 20 : index
    %36 = vector.load %arg9[%c17, %c20] : memref<272x36xf32, #tpu.memory_space<vmem>>, vector<240x4xf32>
    %c0_27 = arith.constant 0 : index
    %c20_28 = arith.constant 20 : index
    %37 = vector.load %arg7[%c0_27, %c20_28] : memref<240x36xf32, #tpu.memory_space<vmem>>, vector<240x4xf32>
    %38 = arith.mulf %36, %37 : vector<240x4xf32>
    %39 = arith.addf %35, %38 : vector<240x4xf32>
    %c25 = arith.constant 25 : index
    %c24 = arith.constant 24 : index
    %40 = vector.load %arg9[%c25, %c24] : memref<272x36xf32, #tpu.memory_space<vmem>>, vector<240x4xf32>
    %c0_29 = arith.constant 0 : index
    %c24_30 = arith.constant 24 : index
    %41 = vector.load %arg7[%c0_29, %c24_30] : memref<240x36xf32, #tpu.memory_space<vmem>>, vector<240x4xf32>
    %42 = arith.mulf %40, %41 : vector<240x4xf32>
    %43 = arith.addf %39, %42 : vector<240x4xf32>
    %c26 = arith.constant 26 : index
    %c28 = arith.constant 28 : index
    %44 = vector.load %arg9[%c26, %c28] : memref<272x36xf32, #tpu.memory_space<vmem>>, vector<240x4xf32>
    %c0_31 = arith.constant 0 : index
    %c28_32 = arith.constant 28 : index
    %45 = vector.load %arg7[%c0_31, %c28_32] : memref<240x36xf32, #tpu.memory_space<vmem>>, vector<240x4xf32>
    %46 = arith.mulf %44, %45 : vector<240x4xf32>
    %47 = arith.addf %43, %46 : vector<240x4xf32>
    %c27 = arith.constant 27 : index
    %c32 = arith.constant 32 : index
    %48 = vector.load %arg9[%c27, %c32] : memref<272x36xf32, #tpu.memory_space<vmem>>, vector<240x4xf32>
    %c0_33 = arith.constant 0 : index
    %c32_34 = arith.constant 32 : index
    %49 = vector.load %arg7[%c0_33, %c32_34] : memref<240x36xf32, #tpu.memory_space<vmem>>, vector<240x4xf32>
    %50 = arith.mulf %48, %49 : vector<240x4xf32>
    %51 = arith.addf %47, %50 : vector<240x4xf32>
    %c0_35 = arith.constant 0 : index
    %c0_36 = arith.constant 0 : index
    %52 = vector.load %arg4[%c0_35, %c0_36] : memref<1x4xf32, #tpu.memory_space<vmem>>, vector<1x4xf32>
    %53 = vector.broadcast %52 : vector<1x4xf32> to vector<240x4xf32>
    %54 = arith.addf %51, %53 : vector<240x4xf32>
    %cst_37 = arith.constant 0.000000e+00 : f32
    %55 = vector.broadcast %cst_37 : f32 to vector<240x4xf32>
    %56 = arith.maximumf %54, %55 : vector<240x4xf32>
    %57 = arith.truncf %56 : vector<240x4xf32> to vector<240x4xbf16>
    %c0_38 = arith.constant 0 : index
    %c0_39 = arith.constant 0 : index
    %58 = vector.load %arg5[%c0_38, %c0_39] : memref<4x16xbf16, #tpu.memory_space<vmem>>, vector<4x16xbf16>
    %cst_40 = arith.constant dense<0.000000e+00> : vector<240x16xf32>
    %59 = tpu.matmul %57, %58, %cst_40 {dimension_numbers = #tpu.dot_dimension_numbers<[1], [0], [0], [1], [0, 0, 1, 1], [], []>} : vector<240x4xbf16>, vector<4x16xbf16>, vector<240x16xf32> -> vector<240x16xf32>
    %c0_41 = arith.constant 0 : index
    %c0_42 = arith.constant 0 : index
    %60 = vector.load %arg6[%c0_41, %c0_42] : memref<1x16xf32, #tpu.memory_space<vmem>>, vector<1x16xf32>
    %61 = vector.broadcast %60 : vector<1x16xf32> to vector<240x16xf32>
    %62 = arith.addf %59, %61 : vector<240x16xf32>
    %63 = arith.addf %62, %0 : vector<240x16xf32>
    %cst_43 = arith.constant 0.000000e+00 : f32
    %64 = vector.broadcast %cst_43 : f32 to vector<240x16xf32>
    %65 = arith.maximumf %63, %64 : vector<240x16xf32>
    %c0_44 = arith.constant 0 : index
    %c0_45 = arith.constant 0 : index
    %66 = vector.load %arg8[%c0_44, %c0_45] : memref<240x16xf32, #tpu.memory_space<vmem>>, vector<240x16xf32>
    tpu.vector_store %arg8[%c0_44, %c0_45], %65 {strides = array<i32>} : memref<240x16xf32, #tpu.memory_space<vmem>>, vector<240x16xf32>,
    return
  }
}

</mosaic_0001>

<bundles_post_ra>
// kernel: tpu_custom_call.1
= control target key start
LH: loop header
LB: loop body
LE: loop exit
PB: predicated region body
PF: predicated region fallthrough
CT: control target
= control target key end

     0   :  { %vm87_vm0 = vcmask 130048   ;;  %vm309_vm1 = vcmask 1041408   ;;  %vm263_vm2 = vcmask 31744   ;;  %vm397_vm3 = vcmask 293888   ;;  %s2558_s24 = smov 124   ;;  %s2559_s25 = smov 120   ;;  %s4113_s1 = inlined_call_operand.vmem [shape: bf16[16,4], index: 1, kind: input, shape index: {}]   ;;  %s4114_s0 = inlined_call_operand.vmem [shape: f32[240,16], index: 0, kind: input, shape index: {}]   ;;  %s4115_s2 = inlined_call_operand.vmem [shape: f32[1,4], index: 2, kind: input, shape index: {}]   ;;  %s4116_s3 = inlined_call_operand.vmem [shape: bf16[4,36], index: 3, kind: input, shape index: {}]   ;;  %s4117_s7 = inlined_call_operand.vmem [shape: f32[240,36], index: 7, kind: input, shape index: {}]   ;;  %s4118_s4 = inlined_call_operand.vmem [shape: f32[1,4], index: 4, kind: input, shape index: {}]   ;;  %s4119_s5 = inlined_call_operand.vmem [shape: bf16[4,16], index: 5, kind: input, shape index: {}]   ;;  %s4120_s6 = inlined_call_operand.vmem [shape: f32[1,16], index: 6, kind: input, shape index: {}]   ;;  %s4121_s8 = inlined_call_operand.vmem [shape: f32[240,16], index: 8, kind: output, shape index: {}]  }
   0x1   :  { %v2503_v0 = vld [vmem:[%s4113_s1] sm:$0xff]  ;;  %v31_v2 = vld [vmem:[%s4114_s0 + $0x8] sm:$0xff]  ;;  %v32_v7 = vld [vmem:[%s4114_s0 + $0x10] sm:$0xff]  ;;  %s2560_s28 = smov 112   ;;  %s2562_s11 = smov 108  }
   0x2   :  { %v30_v1 = vld [vmem:[%s4114_s0] sm:$0xff]  ;;  %v55_v5 = vld [vmem:[%s4114_s0 + $0xc8] sm:$0xff]  ;;  %140 = vmatpush.bf16.msra.mxu0 %v2503_v0  ;;  %2504 = vmatpush.bf16.msra.mxu3 %v2503_v0  ;;  %v33_v8 = vld [vmem:[%s4114_s0 + $0x18] sm:$0xff]  ;;  %s2563_s12 = smov 104   ;;  %s2564_s13 = smov 100  }
   0x3   :  { %v60_v3 = vpack.c.bf16 %v31_v2, %v30_v1  ;;  %v54_v4 = vld [vmem:[%s4114_s0 + $0xc0] sm:$0xff]  ;;  %v56_v9 = vld [vmem:[%s4114_s0 + $0xd0] sm:$0xff]  ;;  %v57_v10 = vld [vmem:[%s4114_s0 + $0xd8] sm:$0xff]  ;;  %v61_v11 = vpack.c.bf16 %v33_v8, %v32_v7  ;;  %s2565_s1 = smov 96  }
   0x4   :  { %v72_v6 = vpack.c.bf16 %v55_v5, %v54_v4  ;;  %v73_v12 = vpack.c.bf16 %v57_v10, %v56_v9  ;;  %v34_v13 = vld [vmem:[%s4114_s0 + $0x20] sm:$0xff]  ;;  %v35_v14 = vld [vmem:[%s4114_s0 + $0x28] sm:$0xff]  ;;  %v36_v19 = vld [vmem:[%s4114_s0 + $0x30] sm:$0xff] }
   0x5   :  { %2458 = vmatmul.msk.bf16.vlgmr.msra.gmra.mxu0 %vm87_vm0, %v60_v3  ;;  %v62_v15 = vpack.c.bf16 %v35_v14, %v34_v13  ;;  %v58_v16 = vld [vmem:[%s4114_s0 + $0xe0] sm:$0xff]  ;;  %v59_v17 = vld [vmem:[%s4114_s0 + $0xe8] sm:$0xff]  ;;  %v37_v20 = vld [vmem:[%s4114_s0 + $0x38] sm:$0xff] }
   0x6   :  { %2470 = vmatmul.msk.bf16.vlgmr.msra.gmra.mxu3 %vm87_vm0, %v72_v6  ;;  %v74_v18 = vpack.c.bf16 %v59_v17, %v58_v16  ;;  %v63_v21 = vpack.c.bf16 %v37_v20, %v36_v19  ;;  %v38_v22 = vld [vmem:[%s4114_s0 + $0x40] sm:$0xff]  ;;  %v39_v23 = vld [vmem:[%s4114_s0 + $0x48] sm:$0xff]  ;;  %v40_v25 = vld [vmem:[%s4114_s0 + $0x50] sm:$0xff] }
   0x7   :  { %v64_v24 = vpack.c.bf16 %v39_v23, %v38_v22  ;;  %v41_v26 = vld [vmem:[%s4114_s0 + $0x58] sm:$0xff]  ;;  %v42_v28 = vld [vmem:[%s4114_s0 + $0x60] sm:$0xff]  ;;  %v43_v29 = vld [vmem:[%s4114_s0 + $0x68] sm:$0xff] }
   0x8   :  { %v65_v27 = vpack.c.bf16 %v41_v26, %v40_v25  ;;  %v66_v30 = vpack.c.bf16 %v43_v29, %v42_v28  ;;  %v262_v31 = vld [vmem:[%s4116_s3] sm:$0x3]  ;;  %v44_v33 = vld [vmem:[%s4114_s0 + $0x70] sm:$0xff]  ;;  %v45_v34 = vld [vmem:[%s4114_s0 + $0x78] sm:$0xff]  ;;  %s2561_s3 = smov 116  }
   0x9   :  { %v311_v32 = vsel %vm309_vm1, %v262_v31, 0  ;;  %v67_v35 = vpack.c.bf16 %v45_v34, %v44_v33  ;;  %v46_v36 = vld [vmem:[%s4114_s0 + $0x80] sm:$0xff]  ;;  %v47_v37 = vld [vmem:[%s4114_s0 + $0x88] sm:$0xff]  ;;  %v48_v48 = vld [vmem:[%s4114_s0 + $0x90] sm:$0xff] }
   0xa   :  { %2505 = vmatpush.bf16.msrb.mxu3 %v311_v32  ;;  %320 = vmatpush.bf16.msra.mxu1 %v311_v32  ;;  %v68_v38 = vpack.c.bf16 %v47_v37, %v46_v36  ;;  %v2704_v40 = vld [vmem:[%s4115_s2] ss:$0 sm:$0xff]  ;;  %v49_v49 = vld [vmem:[%s4114_s0 + $0x98] sm:$0xff]  ;;  %v51_v2 = vld [vmem:[%s4114_s0 + $0xa8] sm:$0xff] }
   0xb   :  { %v69_v53 = vpack.c.bf16 %v49_v49, %v48_v48  ;;  %v50_v1 = vld [vmem:[%s4114_s0 + $0xa0] sm:$0xff]  ;;  %v52_v16 = vld [vmem:[%s4114_s0 + $0xb0] sm:$0xff]  ;;  %v53_v17 = vld [vmem:[%s4114_s0 + $0xb8] sm:$0xff]  ;;  %v2557_v48 = vmov 0.0  }
   0xc   :  { %v70_v6 = vpack.c.bf16 %v51_v2, %v50_v1  ;;  %v71_v19 = vpack.c.bf16 %v53_v17, %v52_v16  ;;  %398 = vst.msk [vmem:[#allocation2] sm:$0xff] %vm397_vm3, %v2557_v48 }
   0xd   :  { %399 = vst.msk [vmem:[#allocation2 + $0x8] sm:$0xff] %vm397_vm3, %v2557_v48 }
   0xe   :  { %400 = vst.msk [vmem:[#allocation2 + $0x100] sm:$0xff] %vm397_vm3, %v2557_v48 }
   0xf   :  { %401 = vst.msk [vmem:[#allocation2 + $0x108] sm:$0xff] %vm397_vm3, %v2557_v48 }
  0x15   :  { %2459 = vmatmul.msk.bf16.gmra.mxu0 %vm87_vm0, %v61_v11 }
  0x16   :  { %2471 = vmatmul.msk.bf16.gmra.mxu3 %vm87_vm0, %v73_v12 }
  0x25   :  { %2460 = vmatmul.msk.bf16.gmra.mxu0 %vm87_vm0, %v62_v15 }
  0x26   :  { %2472 = vmatmul.msk.bf16.gmra.mxu3 %vm87_vm0, %v74_v18 }
  0x35   :  { %2461 = vmatmul.msk.bf16.gmra.mxu0 %vm87_vm0, %v63_v21 }
  0x45   :  { %2462 = vmatmul.msk.bf16.gmra.mxu0 %vm87_vm0, %v64_v24 }
  0x55   :  { %2463 = vmatmul.msk.bf16.gmra.mxu0 %vm87_vm0, %v65_v27 }
  0x65   :  { %2464 = vmatmul.msk.bf16.gmra.mxu0 %vm87_vm0, %v66_v30 }
  0x75   :  { %2465 = vmatmul.msk.bf16.gmra.mxu0 %vm87_vm0, %v67_v35 }
  0x82   :  { %v142_v39 = vpop.f32.mrf.mxu0 }
  0x83   :  { %v143_v42 = vadd.f32 %v2704_v40, %v142_v39 }
  0x85   :  { %2466 = vmatmul.msk.bf16.gmra.mxu0 %vm87_vm0, %v68_v38  ;;  %v217_v45 = vmax.f32 %v143_v42, 0.0 }
  0x89   :  { %v202_v41 = vpop.f32.mrf.mxu3 }
  0x8a   :  { %v144_v43 = vpop.f32.mrf.mxu0  ;;  %v203_v47 = vadd.f32 %v2704_v40, %v202_v41 }
  0x8b   :  { %v145_v44 = vadd.f32 %v2704_v40, %v144_v43 }
  0x8c   :  { %v241_v52 = vmax.f32 %v203_v47, 0.0 }
  0x8d   :  { %v218_v46 = vmax.f32 %v145_v44, 0.0 }
  0x8f   :  { %v247_v50 = vpack.c.bf16 %v218_v46, %v217_v45 }
  0x91   :  { %v204_v51 = vpop.f32.mrf.mxu3  ;;  %2473 = vmatmul.msk.bf16.vlgmr.msra.gmra.mxu1 %vm263_vm2, %v247_v50 }
  0x92   :  { %v205_v54 = vadd.f32 %v2704_v40, %v204_v51  ;;  %v147_v55 = vpop.f32.mrf.mxu0  ;;  %v2762_v51 = vld [vmem:[%s4117_s7] sm:$0xff] }
  0x93   :  { %v148_v58 = vadd.f32 %v2704_v40, %v147_v55 }
  0x94   :  { %v242_v56 = vmax.f32 %v205_v54, 0.0 }
  0x95   :  { %2467 = vmatmul.msk.bf16.gmra.mxu0 %vm87_vm0, %v69_v53  ;;  %v219_v61 = vmax.f32 %v148_v58, 0.0  ;;  %v762_v58 = vld [vmem:[#allocation2 + $0x7] sm:$0xff] }
  0x96   :  { %v259_v57 = vpack.c.bf16 %v242_v56, %v241_v52  ;;  %v552_v52 = vld [vmem:[#allocation2 + $0x6] sm:$0xff] }
  0x97   :  { %v582_v53 = vmul.f32 %v552_v52, %v2762_v51 }
  0x98   :  { %2485 = vmatmul.msk.bf16.vlgmr.msrb.gmra.mxu3 %vm263_vm2, %v259_v57 }
  0x99   :  { %v207_v59 = vpop.f32.mrf.mxu3  ;;  %642 = vrot.lane.b32.xlu0 %v582_v53, %s2558_s24 }
  0x9a   :  { %v149_v60 = vpop.f32.mrf.mxu0  ;;  %v208_v0 = vadd.f32 %v2704_v40, %v207_v59 }
  0x9b   :  { %v150_v62 = vadd.f32 %v2704_v40, %v149_v60  ;;  %v792_v60 = vmul.f32 %v762_v58, %v2762_v51 }
  0x9c   :  { %v243_v5 = vmax.f32 %v208_v0, 0.0 }
  0x9d   :  { %v220_v63 = vmax.f32 %v150_v62, 0.0 }
  0x9f   :  { %v248_v3 = vpack.c.bf16 %v220_v63, %v219_v61 }
  0xa1   :  { %v209_v4 = vpop.f32.mrf.mxu3  ;;  %2474 = vmatmul.msk.bf16.gmra.mxu1 %vm263_vm2, %v248_v3  ;;  %852 = vrot.lane.b32.xlu0 %v792_v60, %s2559_s25 }
  0xa2   :  { %v210_v7 = vadd.f32 %v2704_v40, %v209_v4  ;;  %v152_v8 = vpop.f32.mrf.mxu0 }
  0xa3   :  { %v153_v11 = vadd.f32 %v2704_v40, %v152_v8 }
  0xa4   :  { %v244_v9 = vmax.f32 %v210_v7, 0.0 }
  0xa5   :  { %2468 = vmatmul.msk.bf16.gmra.mxu0 %vm87_vm0, %v70_v6  ;;  %v221_v13 = vmax.f32 %v153_v11, 0.0 }
  0xa6   :  { %v260_v10 = vpack.c.bf16 %v244_v9, %v243_v5 }
  0xa8   :  { %2486 = vmatmul.msk.bf16.gmra.mxu3 %vm263_vm2, %v260_v10 }
  0xa9   :  { %v212_v21 = vpop.f32.mrf.mxu3 }
  0xaa   :  { %v154_v12 = vpop.f32.mrf.mxu0  ;;  %v213_v23 = vadd.f32 %v2704_v40, %v212_v21 }
  0xab   :  { %v155_v14 = vadd.f32 %v2704_v40, %v154_v12 }
  0xac   :  { %v245_v29 = vmax.f32 %v213_v23, 0.0 }
  0xad   :  { %v222_v15 = vmax.f32 %v155_v14, 0.0  ;;  %v2781_v14 = vld [vmem:[%s4117_s7 + $0x8] sm:$0xff] }
  0xaf   :  { %v249_v18 = vpack.c.bf16 %v222_v15, %v221_v13 }
  0xb1   :  { %2475 = vmatmul.msk.bf16.gmra.mxu1 %vm263_vm2, %v249_v18  ;;  %v214_v27 = vpop.f32.mrf.mxu3 }
  0xb2   :  { %v157_v20 = vpop.f32.mrf.mxu0  ;;  %v215_v30 = vadd.f32 %v2704_v40, %v214_v27 }
  0xb3   :  { %v158_v22 = vadd.f32 %v2704_v40, %v157_v20 }
  0xb4   :  { %v246_v32 = vmax.f32 %v215_v30, 0.0 }
  0xb5   :  { %2469 = vmatmul.msk.bf16.gmra.mxu0 %vm87_vm0, %v71_v19  ;;  %v223_v25 = vmax.f32 %v158_v22, 0.0 }
  0xb6   :  { %v261_v33 = vpack.c.bf16 %v246_v32, %v245_v29 }
  0xb8   :  { %2487 = vmatmul.msk.bf16.gmra.mxu3 %vm263_vm2, %v261_v33 }
  0xba   :  { %v159_v24 = vpop.f32.mrf.mxu0 }
  0xbb   :  { %v160_v26 = vadd.f32 %v2704_v40, %v159_v24 }
  0xbd   :  { %v224_v28 = vmax.f32 %v160_v26, 0.0 }
  0xbf   :  { %v250_v31 = vpack.c.bf16 %v224_v28, %v223_v25  ;;  %v2793_v25 = vld [vmem:[%s4117_s7 + $0x10] sm:$0xff] }
  0xc1   :  { %2476 = vmatmul.msk.bf16.gmra.mxu1 %vm263_vm2, %v250_v31 }
  0xc2   :  { %v162_v34 = vpop.f32.mrf.mxu0 }
  0xc3   :  { %v163_v35 = vadd.f32 %v2704_v40, %v162_v34 }
  0xc5   :  { %v225_v37 = vmax.f32 %v163_v35, 0.0 }
  0xca   :  { %v164_v36 = vpop.f32.mrf.mxu0 }
  0xcb   :  { %v165_v38 = vadd.f32 %v2704_v40, %v164_v36 }
  0xcd   :  { %v226_v39 = vmax.f32 %v165_v38, 0.0 }
  0xcf   :  { %v251_v41 = vpack.c.bf16 %v226_v39, %v225_v37 }
  0xd1   :  { %2477 = vmatmul.msk.bf16.gmra.mxu1 %vm263_vm2, %v251_v41 }
  0xd2   :  { %v167_v42 = vpop.f32.mrf.mxu0 }
  0xd3   :  { %v168_v43 = vadd.f32 %v2704_v40, %v167_v42 }
  0xd5   :  { %v227_v45 = vmax.f32 %v168_v43, 0.0 }
  0xda   :  { %v169_v44 = vpop.f32.mrf.mxu0 }
  0xdb   :  { %v170_v46 = vadd.f32 %v2704_v40, %v169_v44 }
  0xdd   :  { %v228_v47 = vmax.f32 %v170_v46, 0.0 }
  0xdf   :  { %v252_v49 = vpack.c.bf16 %v228_v47, %v227_v45 }
  0xe1   :  { %2478 = vmatmul.msk.bf16.gmra.mxu1 %vm263_vm2, %v252_v49 }
  0xe2   :  { %v172_v50 = vpop.f32.mrf.mxu0 }
  0xe3   :  { %v173_v54 = vadd.f32 %v2704_v40, %v172_v50 }
  0xe5   :  { %v229_v56 = vmax.f32 %v173_v54, 0.0 }
  0xea   :  { %v174_v55 = vpop.f32.mrf.mxu0 }
  0xeb   :  { %v175_v57 = vadd.f32 %v2704_v40, %v174_v55  ;;  %v2822_v55 = vld [vmem:[%s4117_s7 + $0x18] sm:$0xff] }
  0xed   :  { %v230_v59 = vmax.f32 %v175_v57, 0.0 }
  0xef   :  { %v253_v61 = vpack.c.bf16 %v230_v59, %v229_v56 }
  0xf1   :  { %2479 = vmatmul.msk.bf16.gmra.mxu1 %vm263_vm2, %v253_v61 }
  0xf2   :  { %v177_v62 = vpop.f32.mrf.mxu0 }
  0xf3   :  { %v178_v63 = vadd.f32 %v2704_v40, %v177_v62 }
  0xf5   :  { %v231_v1 = vmax.f32 %v178_v63, 0.0 }
  0xfa   :  { %v179_v0 = vpop.f32.mrf.mxu0 }
  0xfb   :  { %v180_v2 = vadd.f32 %v2704_v40, %v179_v0 }
  0xfd   :  { %v232_v3 = vmax.f32 %v180_v2, 0.0 }
  0xff   :  { %v254_v4 = vpack.c.bf16 %v232_v3, %v231_v1 }
 0x101   :  { %2480 = vmatmul.msk.bf16.gmra.mxu1 %vm263_vm2, %v254_v4 }
 0x102   :  { %v182_v5 = vpop.f32.mrf.mxu0 }
 0x103   :  { %v183_v6 = vadd.f32 %v2704_v40, %v182_v5 }
 0x105   :  { %v233_v8 = vmax.f32 %v183_v6, 0.0 }
 0x10a   :  { %v184_v7 = vpop.f32.mrf.mxu0 }
 0x10b   :  { %v185_v9 = vadd.f32 %v2704_v40, %v184_v7 }
 0x10d   :  { %v234_v10 = vmax.f32 %v185_v9, 0.0 }
 0x10e   :  { %v322_v11 = vpop.f32.mrf.mxu1 }
 0x10f   :  { %v255_v12 = vpack.c.bf16 %v234_v10, %v233_v8  ;;  %402 = vst.msk [vmem:[#allocation2 + $0x10] sm:$0xff] %vm397_vm3, %v322_v11  ;;  %v488_v11 = vld [vmem:[%s4117_s7 + $0xd0] sm:$0xff] }
 0x111   :  { %2481 = vmatmul.msk.bf16.gmra.mxu1 %vm263_vm2, %v255_v12 }
 0x112   :  { %v187_v13 = vpop.f32.mrf.mxu0 }
 0x113   :  { %v188_v18 = vadd.f32 %v2704_v40, %v187_v13 }
 0x115   :  { %v235_v23 = vmax.f32 %v188_v18, 0.0 }
 0x116   :  { %v324_v15 = vpop.f32.mrf.mxu1  ;;  %v1153_v16 = vld [vmem:[#allocation2 + $0x10] sm:$0xff] }
 0x117   :  { %v763_v17 = vld [vmem:[#allocation2 + $0xf] sm:$0xff]  ;;  %403 = vst.msk [vmem:[#allocation2 + $0x18] sm:$0xff] %vm397_vm3, %v324_v15  ;;  %1213 = vrot.lane.b32.xlu0 %v1153_v16, %s2560_s28 }
 0x118   :  { %v793_v19 = vmul.f32 %v763_v17, %v2781_v14  ;;  %v553_v21 = vld [vmem:[#allocation2 + $0xe] sm:$0xff]  ;;  %v973_v36 = vmul.f32 %v763_v17, %v2762_v51 }
 0x119   :  { %v583_v27 = vmul.f32 %v553_v21, %v2781_v14  ;;  %v487_v21 = vld [vmem:[%s4117_s7 + $0xc8] sm:$0xff] }
 0x11a   :  { %854 = vrot.lane.b32.xlu1 %v793_v19, %s2559_s25  ;;  %v189_v20 = vpop.f32.mrf.mxu0 }
 0x11b   :  { %v382_v22 = vpop.f32.mrf.mxu3  ;;  %v190_v24 = vadd.f32 %v2704_v40, %v189_v20 }
 0x11c   :  { %426 = vst.msk [vmem:[#allocation2 + $0xd0] sm:$0xff] %vm397_vm3, %v382_v22 }
 0x11d   :  { %v236_v26 = vmax.f32 %v190_v24, 0.0 }
 0x11e   :  { %v327_v28 = vpop.f32.mrf.mxu1  ;;  %v764_v29 = vld [vmem:[#allocation2 + $0x17] sm:$0xff] }
 0x11f   :  { %v256_v30 = vpack.c.bf16 %v236_v26, %v235_v23  ;;  %404 = vst.msk [vmem:[#allocation2 + $0x20] sm:$0xff] %vm397_vm3, %v327_v28  ;;  %644 = vrot.lane.b32.xlu0 %v583_v27, %s2558_s24  ;;  %v794_v31 = vmul.f32 %v764_v29, %v2793_v25  ;;  %v1154_v32 = vld [vmem:[#allocation2 + $0x18] sm:$0xff]  ;;  %v974_v50 = vmul.f32 %v764_v29, %v2781_v14  ;;  %v2862_v28 = vld [vmem:[%s4117_s7 + $0x20] sm:$0xff] }
 0x120   :  { %v554_v35 = vld [vmem:[#allocation2 + $0x16] sm:$0xff] }
 0x121   :  { %2482 = vmatmul.msk.bf16.gmra.mxu1 %vm263_vm2, %v256_v30  ;;  %856 = vrot.lane.b32.xlu2 %v794_v31, %s2559_s25  ;;  %v584_v39 = vmul.f32 %v554_v35, %v2793_v25  ;;  %v1333_v56 = vld [vmem:[#allocation2 + $0x11] sm:$0xff] }
 0x122   :  { %1215 = vrot.lane.b32.xlu1 %v1154_v32, %s2560_s28  ;;  %v192_v33 = vpop.f32.mrf.mxu0  ;;  %v1363_v61 = vmul.f32 %v1333_v56, %v2762_v51 }
 0x123   :  { %v384_v34 = vpop.f32.mrf.mxu3  ;;  %v193_v38 = vadd.f32 %v2704_v40, %v192_v33  ;;  %v1177_v46 = vld [vmem:[#allocation2 + $0xd0] sm:$0xff] }
 0x124   :  { %427 = vst.msk [vmem:[#allocation2 + $0xd8] sm:$0xff] %vm397_vm3, %v384_v34 }
 0x125   :  { %v237_v44 = vmax.f32 %v193_v38, 0.0 }
 0x126   :  { %v329_v37 = vpop.f32.mrf.mxu1  ;;  %v1155_v41 = vld [vmem:[#allocation2 + $0x20] sm:$0xff] }
 0x127   :  { %405 = vst.msk [vmem:[#allocation2 + $0x28] sm:$0xff] %vm397_vm3, %v329_v37  ;;  %1033 = vrot.lane.b32.xlu0 %v973_v36, %s2561_s3  ;;  %v765_v48 = vld [vmem:[#allocation2 + $0x1f] sm:$0xff] }
 0x128   :  { %v975_v53 = vmul.f32 %v765_v48, %v2793_v25  ;;  %v795_v57 = vmul.f32 %v765_v48, %v2822_v55  ;;  %v1334_v58 = vld [vmem:[#allocation2 + $0x19] sm:$0xff] }
 0x129   :  { %1217 = vrot.lane.b32.xlu2 %v1155_v41, %s2560_s28  ;;  %v1364_v62 = vmul.f32 %v1334_v58, %v2781_v14  ;;  %v555_v2 = vld [vmem:[#allocation2 + $0x1e] sm:$0xff]  ;;  %v1544_v4 = vmul.f32 %v1334_v58, %v2762_v51 }
 0x12a   :  { %646 = vrot.lane.b32.xlu1 %v584_v39, %s2558_s24  ;;  %v194_v42 = vpop.f32.mrf.mxu0  ;;  %v1724_v5 = vld [vmem:[#allocation2 + $0x1a] sm:$0xff]  ;;  %v585_v8 = vmul.f32 %v555_v2, %v2822_v55 }
 0x12b   :  { %v387_v43 = vpop.f32.mrf.mxu3  ;;  %v195_v45 = vadd.f32 %v2704_v40, %v194_v42  ;;  %v1754_v10 = vmul.f32 %v1724_v5, %v2762_v51  ;;  %v578_v12 = vld [vmem:[#allocation2 + $0xd6] sm:$0xff] }
 0x12c   :  { %428 = vst.msk [vmem:[#allocation2 + $0xe0] sm:$0xff] %vm397_vm3, %v387_v43  ;;  %v608_v18 = vmul.f32 %v578_v12, %v488_v11  ;;  %v788_v20 = vld [vmem:[#allocation2 + $0xd7] sm:$0xff] }
 0x12d   :  { %v238_v47 = vmax.f32 %v195_v45, 0.0  ;;  %v998_v24 = vmul.f32 %v788_v20, %v487_v21  ;;  %v818_v26 = vmul.f32 %v788_v20, %v488_v11  ;;  %v489_v41 = vld [vmem:[%s4117_s7 + $0xd8] sm:$0xff] }
 0x12e   :  { %v332_v49 = vpop.f32.mrf.mxu1  ;;  %v1156_v15 = vld [vmem:[#allocation2 + $0x28] sm:$0xff] }
 0x12f   :  { %v257_v52 = vpack.c.bf16 %v238_v47, %v237_v44  ;;  %406 = vst.msk [vmem:[#allocation2 + $0x30] sm:$0xff] %vm397_vm3, %v332_v49  ;;  %1261 = vrot.lane.b32.xlu0 %v1177_v46, %s2560_s28  ;;  %v766_v19 = vld [vmem:[#allocation2 + $0x27] sm:$0xff] }
 0x130   :  { %v976_v22 = vmul.f32 %v766_v19, %v2822_v55  ;;  %v1725_v27 = vld [vmem:[#allocation2 + $0x22] sm:$0xff]  ;;  %v796_v32 = vmul.f32 %v766_v19, %v2862_v28 }
 0x131   :  { %2483 = vmatmul.msk.bf16.gmra.mxu1 %vm263_vm2, %v257_v52  ;;  %1037 = vrot.lane.b32.xlu2 %v975_v53, %s2561_s3  ;;  %v1755_v29 = vmul.f32 %v1725_v27, %v2781_v14  ;;  %v556_v30 = vld [vmem:[#allocation2 + $0x26] sm:$0xff] }
 0x132   :  { %1035 = vrot.lane.b32.xlu1 %v974_v50, %s2561_s3  ;;  %v197_v54 = vpop.f32.mrf.mxu0  ;;  %v586_v33 = vmul.f32 %v556_v30, %v2862_v28  ;;  %v1335_v34 = vld [vmem:[#allocation2 + $0x21] sm:$0xff] }
 0x133   :  { %v198_v60 = vadd.f32 %v2704_v40, %v197_v54  ;;  %v389_v9 = vpop.f32.mrf.mxu3  ;;  %v1365_v35 = vmul.f32 %v1335_v34, %v2793_v25  ;;  %v1935_v36 = vld [vmem:[#allocation2 + $0x23] sm:$0xff]  ;;  %v1545_v38 = vmul.f32 %v1335_v34, %v2781_v14 }
 0x134   :  { %429 = vst.msk [vmem:[#allocation2 + $0xe8] sm:$0xff] %vm397_vm3, %v389_v9  ;;  %v1965_v39 = vmul.f32 %v1935_v36, %v2781_v14  ;;  %v579_v42 = vld [vmem:[#allocation2 + $0xde] sm:$0xff]  ;;  %v2888_v50 = vld [vmem:[%s4117_s7 + $0x28] sm:$0xff]  ;;  %v2919_v9 = vld [vmem:[%s4117_s7 + $0x30] sm:$0xff] }
 0x135   :  { %v239_v0 = vmax.f32 %v198_v60, 0.0  ;;  %v609_v43 = vmul.f32 %v579_v42, %v489_v41  ;;  %v789_v44 = vld [vmem:[#allocation2 + $0xdf] sm:$0xff] }
 0x136   :  { %v334_v59 = vpop.f32.mrf.mxu1  ;;  %v999_v46 = vmul.f32 %v789_v44, %v488_v11  ;;  %v1157_v47 = vld [vmem:[#allocation2 + $0x30] sm:$0xff]  ;;  %v819_v49 = vmul.f32 %v789_v44, %v489_v41  ;;  %v490_v11 = vld [vmem:[%s4117_s7 + $0xe0] sm:$0xff] }
 0x137   :  { %407 = vst.msk [vmem:[#allocation2 + $0x38] sm:$0xff] %vm397_vm3, %v334_v59  ;;  %858 = vrot.lane.b32.xlu0 %v795_v57, %s2559_s25  ;;  %v767_v48 = vld [vmem:[#allocation2 + $0x2f] sm:$0xff] }
 0x138   :  { %v557_v52 = vld [vmem:[#allocation2 + $0x2e] sm:$0xff]  ;;  %v977_v54 = vmul.f32 %v767_v48, %v2862_v28 }
 0x139   :  { %1425 = vrot.lane.b32.xlu2 %v1364_v62, %s2562_s11  ;;  %v587_v57 = vmul.f32 %v557_v52, %v2888_v50  ;;  %v1936_v58 = vld [vmem:[#allocation2 + $0x2b] sm:$0xff] }
 0x13a   :  { %1423 = vrot.lane.b32.xlu1 %v1363_v61, %s2562_s11  ;;  %v199_v63 = vpop.f32.mrf.mxu0  ;;  %v1336_v59 = vld [vmem:[#allocation2 + $0x29] sm:$0xff]  ;;  %v1966_v60 = vmul.f32 %v1936_v58, %v2793_v25  ;;  %v2898_v61 = vpop.permute.xlu0 %642 }
 0x13b   :  { %v200_v1 = vadd.f32 %v2704_v40, %v199_v63  ;;  %v1934_v40 = vld [vmem:[#allocation2 + $0x1b] sm:$0xff]  ;;  %v392_v17 = vpop.f32.mrf.mxu3  ;;  %v1366_v63 = vmul.f32 %v1336_v59, %v2822_v55  ;;  %v580_v12 = vld [vmem:[#allocation2 + $0xe6] sm:$0xff] }
 0x13c   :  { %v1964_v16 = vmul.f32 %v1934_v40, %v2762_v51  ;;  %430 = vst.msk [vmem:[#allocation2 + $0xf0] sm:$0xff] %vm397_vm3, %v392_v17 }
 0x13d   :  { %v240_v3 = vmax.f32 %v200_v1, 0.0  ;;  %v790_v1 = vld [vmem:[#allocation2 + $0xe7] sm:$0xff] }
 0x13e   :  { %v337_v6 = vpop.f32.mrf.mxu1  ;;  %v768_v19 = vld [vmem:[#allocation2 + $0x37] sm:$0xff] }
 0x13f   :  { %v258_v7 = vpack.c.bf16 %v240_v3, %v239_v0  ;;  %408 = vst.msk [vmem:[#allocation2 + $0x40] sm:$0xff] %vm397_vm3, %v337_v6  ;;  %1604 = vrot.lane.b32.xlu0 %v1544_v4, %s2563_s12  ;;  %v797_v0 = vmul.f32 %v767_v48, %v2888_v50  ;;  %v1726_v3 = vld [vmem:[#allocation2 + $0x2a] sm:$0xff]  ;;  %v1000_v4 = vmul.f32 %v790_v1, %v489_v41  ;;  %v1727_v34 = vld [vmem:[#allocation2 + $0x32] sm:$0xff] }
 0x141   :  { %2484 = vmatmul.msk.bf16.gmra.mxu1 %vm263_vm2, %v258_v7  ;;  %1814 = vrot.lane.b32.xlu2 %v1754_v10, %s2564_s13  ;;  %v1756_v7 = vmul.f32 %v1726_v3, %v2793_v25  ;;  %v558_v10 = vld [vmem:[#allocation2 + $0x36] sm:$0xff] }
 0x142   :  { %648 = vrot.lane.b32.xlu1 %v585_v8, %s2558_s24  ;;  %v2910_v6 = vpop.permute.xlu0 %852  ;;  %v1546_v8 = vmul.f32 %v1336_v59, %v2793_v25 }
 0x143   :  { %v394_v56 = vpop.f32.mrf.mxu3  ;;  %v581_v58 = vld [vmem:[#allocation2 + $0xee] sm:$0xff] }
 0x144   :  { %431 = vst.msk [vmem:[#allocation2 + $0xf8] sm:$0xff] %vm397_vm3, %v394_v56 }
 0x146   :  { %v339_v13 = vpop.f32.mrf.mxu1  ;;  %v1159_v42 = vld [vmem:[#allocation2 + $0x40] sm:$0xff] }
 0x147   :  { %409 = vst.msk [vmem:[#allocation2 + $0x48] sm:$0xff] %vm397_vm3, %v339_v13  ;;  %1219 = vrot.lane.b32.xlu0 %v1156_v15, %s2560_s28  ;;  %v588_v13 = vmul.f32 %v558_v10, %v2919_v9  ;;  %v769_v48 = vld [vmem:[#allocation2 + $0x3f] sm:$0xff] }
 0x148   :  { %v979_v56 = vmul.f32 %v769_v48, %v2919_v9 }
 0x149   :  { %694 = vrot.lane.b32.xlu2 %v608_v18, %s2558_s24  ;;  %v1158_v18 = vld [vmem:[#allocation2 + $0x38] sm:$0xff] }
 0x14a   :  { %2024 = vrot.lane.b32.xlu1 %v1964_v16, %s2565_s1  ;;  %v610_v16 = vmul.f32 %v580_v12, %v490_v11 }
 0x14e   :  { %v342_v23 = vpop.f32.mrf.mxu1 }
 0x14f   :  { %410 = vst.msk [vmem:[#allocation2 + $0x50] sm:$0xff] %vm397_vm3, %v342_v23  ;;  %1039 = vrot.lane.b32.xlu0 %v976_v22, %s2561_s3  ;;  %v798_v22 = vmul.f32 %v768_v19, %v2919_v9 }
 0x151   :  { %904 = vrot.lane.b32.xlu2 %v818_v26, %s2559_s25  ;;  %v978_v26 = vmul.f32 %v768_v19, %v2888_v50 }
 0x152   :  { %1083 = vrot.lane.b32.xlu1 %v998_v24, %s2561_s3  ;;  %v820_v24 = vmul.f32 %v790_v1, %v490_v11 }
 0x156   :  { %v344_v31 = vpop.f32.mrf.mxu1 }
 0x157   :  { %411 = vst.msk [vmem:[#allocation2 + $0x58] sm:$0xff] %vm397_vm3, %v344_v31  ;;  %1816 = vrot.lane.b32.xlu0 %v1755_v29, %s2564_s13  ;;  %v1337_v29 = vld [vmem:[#allocation2 + $0x31] sm:$0xff] }
 0x159   :  { %650 = vrot.lane.b32.xlu2 %v586_v33, %s2558_s24  ;;  %v1547_v33 = vmul.f32 %v1337_v29, %v2822_v55 }
 0x15a   :  { %860 = vrot.lane.b32.xlu1 %v796_v32, %s2559_s25  ;;  %v1937_v32 = vld [vmem:[#allocation2 + $0x33] sm:$0xff] }
 0x15b   :  { %v1967_v36 = vmul.f32 %v1937_v32, %v2822_v55 }
 0x15e   :  { %v347_v37 = vpop.f32.mrf.mxu1 }
 0x15f   :  { %412 = vst.msk [vmem:[#allocation2 + $0x60] sm:$0xff] %vm397_vm3, %v347_v37  ;;  %1427 = vrot.lane.b32.xlu0 %v1365_v35, %s2562_s11  ;;  %v1757_v37 = vmul.f32 %v1727_v34, %v2822_v55 }
 0x161   :  { %2026 = vrot.lane.b32.xlu2 %v1965_v39, %s2565_s1 }
 0x162   :  { %1606 = vrot.lane.b32.xlu1 %v1545_v38, %s2563_s12 }
 0x166   :  { %v349_v45 = vpop.f32.mrf.mxu1 }
 0x167   :  { %413 = vst.msk [vmem:[#allocation2 + $0x68] sm:$0xff] %vm397_vm3, %v349_v45  ;;  %696 = vrot.lane.b32.xlu0 %v609_v43, %s2558_s24  ;;  %v791_v43 = vld [vmem:[#allocation2 + $0xef] sm:$0xff] }
 0x168   :  { %v1001_v45 = vmul.f32 %v791_v43, %v490_v11  ;;  %v1728_v11 = vld [vmem:[#allocation2 + $0x3a] sm:$0xff] }
 0x169   :  { %1085 = vrot.lane.b32.xlu2 %v999_v46, %s2561_s3  ;;  %v1367_v46 = vmul.f32 %v1337_v29, %v2862_v28 }
 0x16a   :  { %1221 = vrot.lane.b32.xlu1 %v1157_v47, %s2560_s28 }
 0x16e   :  { %v352_v53 = vpop.f32.mrf.mxu1 }
 0x16f   :  { %414 = vst.msk [vmem:[#allocation2 + $0x70] sm:$0xff] %vm397_vm3, %v352_v53  ;;  %906 = vrot.lane.b32.xlu0 %v819_v49, %s2559_s25  ;;  %v2976_v53 = vld [vmem:[%s4117_s7 + $0x38] sm:$0xff] }
 0x171   :  { %652 = vrot.lane.b32.xlu2 %v587_v57, %s2558_s24  ;;  %v491_v57 = vld [vmem:[%s4117_s7 + $0xe8] sm:$0xff] }
 0x172   :  { %1041 = vrot.lane.b32.xlu1 %v977_v54, %s2561_s3  ;;  %v559_v54 = vld [vmem:[#allocation2 + $0x3e] sm:$0xff] }
 0x176   :  { %v354_v62 = vpop.f32.mrf.mxu1 }
 0x177   :  { %415 = vst.msk [vmem:[#allocation2 + $0x78] sm:$0xff] %vm397_vm3, %v354_v62  ;;  %2028 = vrot.lane.b32.xlu0 %v1966_v60, %s2565_s1  ;;  %v589_v60 = vmul.f32 %v559_v54, %v2976_v53  ;;  %v611_v62 = vmul.f32 %v581_v58, %v491_v57  ;;  %v3033_v54 = vld [vmem:[%s4117_s7 + $0x48] sm:$0xff] }
 0x179   :  { %862 = vrot.lane.b32.xlu2 %v797_v0, %s2559_s25  ;;  %v1338_v0 = vld [vmem:[#allocation2 + $0x39] sm:$0xff] }
 0x17a   :  { %1429 = vrot.lane.b32.xlu1 %v1366_v63, %s2562_s11  ;;  %v1548_v19 = vmul.f32 %v1338_v0, %v2862_v28 }
 0x17b   :  { %v2906_v2 = vpop.permute.xlu2 %856 }
 0x17e   :  { %v357_v5 = vpop.f32.mrf.mxu1 }
 0x17f   :  { %416 = vst.msk [vmem:[#allocation2 + $0x80] sm:$0xff] %vm397_vm3, %v357_v5  ;;  %1087 = vrot.lane.b32.xlu0 %v1000_v4, %s2561_s3  ;;  %v1368_v4 = vmul.f32 %v1338_v0, %v2888_v50  ;;  %v560_v0 = vld [vmem:[#allocation2 + $0x46] sm:$0xff] }
 0x181   :  { %1608 = vrot.lane.b32.xlu2 %v1546_v8, %s2563_s12  ;;  %v821_v8 = vmul.f32 %v791_v43, %v491_v57  ;;  %v433_v43 = vld [vmem:[#allocation2 + $0xd] sm:$0xff] }
 0x182   :  { %1818 = vrot.lane.b32.xlu1 %v1756_v7, %s2564_s13  ;;  %v799_v7 = vmul.f32 %v769_v48, %v2976_v53  ;;  %v493_v48 = vmul.f32 %v2781_v14, %v433_v43  ;;  %v3045_v14 = vld [vmem:[%s4117_s7 + $0x40] sm:$0xff] }
 0x183   :  { %v2921_v40 = vpop.permute.xlu2 %1217  ;;  %v1339_v43 = vld [vmem:[#allocation2 + $0x41] sm:$0xff] }
 0x186   :  { %v359_v15 = vpop.f32.mrf.mxu1 }
 0x187   :  { %417 = vst.msk [vmem:[#allocation2 + $0x88] sm:$0xff] %vm397_vm3, %v359_v15  ;;  %654 = vrot.lane.b32.xlu0 %v588_v13, %s2558_s24  ;;  %v1758_v15 = vmul.f32 %v1728_v11, %v2862_v28 }
 0x189   :  { %v2929_v17 = vpop.permute.xlu0 %1213  ;;  %1223 = vrot.lane.b32.xlu2 %v1158_v18, %s2560_s28 }
 0x18a   :  { %698 = vrot.lane.b32.xlu1 %v610_v16, %s2558_s24  ;;  %v1938_v16 = vld [vmem:[#allocation2 + $0x3b] sm:$0xff] }
 0x18b   :  { %v2935_v21 = vpop.permute.xlu2 %1037 }
 0x18c   :  { %v2933_v20 = vpop.permute.xlu1 %854 }
 0x18e   :  { %v362_v23 = vpop.f32.mrf.mxu1 }
 0x18f   :  { %418 = vst.msk [vmem:[#allocation2 + $0x90] sm:$0xff] %vm397_vm3, %v362_v23  ;;  %864 = vrot.lane.b32.xlu0 %v798_v22, %s2559_s25  ;;  %v1968_v22 = vmul.f32 %v1938_v16, %v2862_v28  ;;  %v432_v23 = vld [vmem:[#allocation2 + $0x5] sm:$0xff] }
 0x190   :  { %v492_v32 = vmul.f32 %v2762_v51, %v432_v23 }
 0x191   :  { %v2941_v27 = vpop.permute.xlu0 %644  ;;  %1043 = vrot.lane.b32.xlu2 %v978_v26, %s2561_s3  ;;  %v1939_v26 = vld [vmem:[#allocation2 + $0x43] sm:$0xff] }
 0x192   :  { %908 = vrot.lane.b32.xlu1 %v820_v24, %s2559_s25  ;;  %v1969_v34 = vmul.f32 %v1939_v26, %v2888_v50  ;;  %v732_v51 = vadd.f32 %v2898_v61, %v492_v32 }
 0x193   :  { %v2947_v31 = vpop.permute.xlu2 %1425 }
 0x194   :  { %v2945_v30 = vpop.permute.xlu1 %1215  ;;  %v942_v61 = vadd.f32 %v2910_v6, %v732_v51 }
 0x196   :  { %v364_v35 = vpop.f32.mrf.mxu1 }
 0x197   :  { %419 = vst.msk [vmem:[#allocation2 + $0x98] sm:$0xff] %vm397_vm3, %v364_v35  ;;  %1610 = vrot.lane.b32.xlu0 %v1547_v33, %s2563_s12  ;;  %v972_v35 = vld [vmem:[#allocation2 + $0xf7] sm:$0xff] }
 0x199   :  { %v2954_v38 = vpop.permute.xlu0 %1033  ;;  %1820 = vrot.lane.b32.xlu2 %v1757_v37, %s2564_s13 }
 0x19a   :  { %2030 = vrot.lane.b32.xlu1 %v1967_v36, %s2565_s1  ;;  %v2223_v36 = vld [vmem:[%s4119_s5] sm:$0x3] }
 0x19b   :  { %v2960_v41 = vpop.permute.xlu2 %1814 }
 0x19c   :  { %v2958_v39 = vpop.permute.xlu1 %646 }
 0x19e   :  { %v367_v44 = vpop.f32.mrf.mxu1 }
 0x19f   :  { %420 = vst.msk [vmem:[#allocation2 + $0xa0] sm:$0xff] %vm397_vm3, %v367_v44  ;;  %1225 = vrot.lane.b32.xlu0 %v1159_v42, %s2560_s28  ;;  %v2274_v42 = vsel %vm309_vm1, %v2223_v36, 0  ;;  %v1002_v44 = vmul.f32 %v972_v35, %v491_v57  ;;  %v733_v57 = vadd.f32 %v2941_v27, %v493_v48  ;;  %v1340_v35 = vld [vmem:[#allocation2 + $0x49] sm:$0xff]  ;;  %v1549_v48 = vmul.f32 %v1339_v43, %v2888_v50 }
 0x1a0   :  { %2283 = vmatpush.bf16.msra.mxu2 %v2274_v42  ;;  %2506 = vmatpush.bf16.msra.mxu3 %v2274_v42  ;;  %v1550_v51 = vmul.f32 %v1340_v35, %v2919_v9 }
 0x1a1   :  { %v2965_v47 = vpop.permute.xlu0 %1261  ;;  %1431 = vrot.lane.b32.xlu2 %v1367_v46, %s2562_s11  ;;  %v943_v27 = vadd.f32 %v2933_v20, %v733_v57 }
 0x1a2   :  { %1089 = vrot.lane.b32.xlu1 %v1001_v45, %s2561_s3  ;;  %v1160_v45 = vld [vmem:[#allocation2 + $0x48] sm:$0xff] }
 0x1a3   :  { %v2971_v52 = vpop.permute.xlu2 %694 }
 0x1a4   :  { %v2969_v49 = vpop.permute.xlu1 %1035 }
 0x1a5   :  { %v1124_v11 = vadd.f32 %v2969_v49, %v943_v27  ;;  %v1161_v27 = vld [vmem:[#allocation2 + $0x50] sm:$0xff] }
 0x1a6   :  { %v369_v59 = vpop.f32.mrf.mxu1 }
 0x1a7   :  { %421 = vst.msk [vmem:[#allocation2 + $0xa8] sm:$0xff] %vm397_vm3, %v369_v59  ;;  %1045 = vrot.lane.b32.xlu0 %v979_v56, %s2561_s3  ;;  %v561_v56 = vld [vmem:[#allocation2 + $0x4e] sm:$0xff]  ;;  %v1304_v23 = vadd.f32 %v2945_v30, %v1124_v11 }
 0x1a9   :  { %v2985_v63 = vpop.permute.xlu0 %858  ;;  %700 = vrot.lane.b32.xlu2 %v611_v62, %s2558_s24  ;;  %v591_v62 = vmul.f32 %v561_v56, %v3033_v54 }
 0x1aa   :  { %656 = vrot.lane.b32.xlu1 %v589_v60, %s2558_s24  ;;  %v770_v60 = vld [vmem:[#allocation2 + $0x47] sm:$0xff] }
 0x1ab   :  { %v2991_v3 = vpop.permute.xlu2 %904  ;;  %v980_v6 = vmul.f32 %v770_v60, %v2976_v53  ;;  %v800_v49 = vmul.f32 %v770_v60, %v3045_v14 }
 0x1ac   :  { %v2989_v1 = vpop.permute.xlu1 %1423 }
 0x1ae   :  { %v372_v5 = vpop.f32.mrf.mxu1 }
 0x1af   :  { %422 = vst.msk [vmem:[#allocation2 + $0xb0] sm:$0xff] %vm397_vm3, %v372_v5  ;;  %1433 = vrot.lane.b32.xlu0 %v1368_v4, %s2562_s11  ;;  %v1123_v4 = vadd.f32 %v2954_v38, %v942_v61  ;;  %v771_v38 = vld [vmem:[#allocation2 + $0x4f] sm:$0xff] }
 0x1b0   :  { %v801_v20 = vmul.f32 %v771_v38, %v3033_v54 }
 0x1b1   :  { %v2997_v10 = vpop.permute.xlu0 %1604  ;;  %910 = vrot.lane.b32.xlu2 %v821_v8, %s2559_s25 }
 0x1b2   :  { %866 = vrot.lane.b32.xlu1 %v799_v7, %s2559_s25  ;;  %v590_v7 = vmul.f32 %v560_v0, %v3045_v14  ;;  %v1940_v0 = vld [vmem:[#allocation2 + $0x4b] sm:$0xff] }
 0x1b3   :  { %v3003_v13 = vpop.permute.xlu2 %650 }
 0x1b4   :  { %v3001_v12 = vpop.permute.xlu1 %648 }
 0x1b6   :  { %v374_v18 = vpop.f32.mrf.mxu1 }
 0x1b7   :  { %423 = vst.msk [vmem:[#allocation2 + $0xb8] sm:$0xff] %vm397_vm3, %v374_v18  ;;  %1822 = vrot.lane.b32.xlu0 %v1758_v15, %s2564_s13  ;;  %v1303_v15 = vadd.f32 %v2929_v17, %v1123_v4  ;;  %v1162_v4 = vld [vmem:[#allocation2 + $0x58] sm:$0xff] }
 0x1b9   :  { %v3010_v24 = vpop.permute.xlu0 %1219  ;;  %2032 = vrot.lane.b32.xlu2 %v1968_v22, %s2565_s1  ;;  %v1513_v18 = vadd.f32 %v2989_v1, %v1303_v15  ;;  %v1729_v22 = vld [vmem:[#allocation2 + $0x42] sm:$0xff]  ;;  %v3110_v15 = vld [vmem:[%s4117_s7 + $0x50] sm:$0xff] }
 0x1ba   :  { %1612 = vrot.lane.b32.xlu1 %v1548_v19, %s2563_s12  ;;  %v1759_v17 = vmul.f32 %v1729_v22, %v2888_v50 }
 0x1bb   :  { %v3015_v33 = vpop.permute.xlu2 %2026  ;;  %v1694_v26 = vadd.f32 %v2997_v10, %v1513_v18  ;;  %v3077_v10 = vld [vmem:[%s4118_s4] ss:$0 sm:$0xff]  ;;  %v562_v18 = vld [vmem:[#allocation2 + $0x56] sm:$0xff] }
 0x1bc   :  { %v2025_v29 = vpop.permute.xlu1 %2024 }
 0x1bd   :  { %v1904_v1 = vadd.f32 %v2960_v41, %v1694_v26  ;;  %v1369_v41 = vmul.f32 %v1339_v43, %v2919_v9 }
 0x1be   :  { %v377_v37 = vpop.f32.mrf.mxu1 }
 0x1bf   :  { %424 = vst.msk [vmem:[#allocation2 + $0xc0] sm:$0xff] %vm397_vm3, %v377_v37  ;;  %2034 = vrot.lane.b32.xlu0 %v1969_v34, %s2565_s1  ;;  %v1514_v34 = vadd.f32 %v2947_v31, %v1304_v23  ;;  %v2114_v36 = vadd.f32 %v2025_v29, %v1904_v1  ;;  %v981_v23 = vmul.f32 %v771_v38, %v3045_v14 }
 0x1c1   :  { %v3025_v46 = vpop.permute.xlu0 %1039  ;;  %1091 = vrot.lane.b32.xlu2 %v1002_v44, %s2561_s3  ;;  %v2148_v31 = vadd.f32 %v3077_v10, %v2114_v36 }
 0x1c2   :  { %1227 = vrot.lane.b32.xlu1 %v1160_v45, %s2560_s28 }
 0x1c3   :  { %v3039_v59 = vpop.permute.xlu2 %1085  ;;  %v2178_v57 = vmax.f32 %v2148_v31, 0.0 }
 0x1c4   :  { %v3035_v58 = vpop.permute.xlu1 %1083 }
 0x1c6   :  { %v379_v5 = vpop.f32.mrf.mxu1 }
 0x1c7   :  { %425 = vst.msk [vmem:[#allocation2 + $0xc8] sm:$0xff] %vm397_vm3, %v379_v5  ;;  %660 = vrot.lane.b32.xlu0 %v591_v62, %s2558_s24 }
 0x1c9   :  { %v1817_v8 = vpop.permute.xlu0 %1816  ;;  %658 = vrot.lane.b32.xlu2 %v590_v7, %s2558_s24  ;;  %v772_v7 = vld [vmem:[#allocation2 + $0x57] sm:$0xff] }
 0x1ca   :  { %1047 = vrot.lane.b32.xlu1 %v980_v6, %s2561_s3  ;;  %v982_v22 = vmul.f32 %v772_v7, %v3033_v54  ;;  %v802_v36 = vmul.f32 %v772_v7, %v3110_v15  ;;  %v1941_v7 = vld [vmem:[#allocation2 + $0x53] sm:$0xff] }
 0x1cb   :  { %v3060_v19 = vpop.permute.xlu2 %652 }
 0x1cc   :  { %v3057_v16 = vpop.permute.xlu1 %860 }
 0x1cf   :  { %870 = vrot.lane.b32.xlu0 %v801_v20, %s2559_s25  ;;  %v592_v20 = vmul.f32 %v562_v18, %v3110_v15 }
 0x1d1   :  { %v3068_v32 = vpop.permute.xlu0 %1427  ;;  %868 = vrot.lane.b32.xlu2 %v800_v49, %s2559_s25 }
 0x1d2   :  { %1824 = vrot.lane.b32.xlu1 %v1759_v17, %s2564_s13  ;;  %v1731_v17 = vld [vmem:[#allocation2 + $0x52] sm:$0xff] }
 0x1d3   :  { %v3079_v42 = vpop.permute.xlu2 %862 }
 0x1d4   :  { %v1607_v30 = vpop.permute.xlu1 %1606 }
 0x1d5   :  { %v1695_v37 = vadd.f32 %v1607_v30, %v1514_v34  ;;  %v1761_v34 = vmul.f32 %v1731_v17, %v2976_v53  ;;  %v434_v30 = vld [vmem:[#allocation2 + $0x15] sm:$0xff]  ;;  %v3162_v17 = vld [vmem:[%s4117_s7 + $0x60] sm:$0xff] }
 0x1d6   :  { %v494_v43 = vmul.f32 %v2793_v25, %v434_v30 }
 0x1d7   :  { %v1905_v44 = vadd.f32 %v1817_v8, %v1695_v37  ;;  %1616 = vrot.lane.b32.xlu0 %v1550_v51, %s2563_s12  ;;  %v1370_v37 = vmul.f32 %v1340_v35, %v2976_v53  ;;  %v1341_v51 = vld [vmem:[#allocation2 + $0x51] sm:$0xff] }
 0x1d8   :  { %v1551_v35 = vmul.f32 %v1341_v51, %v2976_v53 }
 0x1d9   :  { %v2115_v45 = vadd.f32 %v3015_v33, %v1905_v44  ;;  %v3087_v56 = vpop.permute.xlu0 %696  ;;  %1614 = vrot.lane.b32.xlu2 %v1549_v48, %s2563_s12  ;;  %v1970_v33 = vmul.f32 %v1940_v0, %v2919_v9  ;;  %v1730_v48 = vld [vmem:[#allocation2 + $0x4a] sm:$0xff] }
 0x1da   :  { %1435 = vrot.lane.b32.xlu1 %v1369_v41, %s2562_s11  ;;  %v734_v41 = vadd.f32 %v2958_v39, %v494_v43  ;;  %v1942_v39 = vld [vmem:[#allocation2 + $0x5b] sm:$0xff] }
 0x1db   :  { %v2149_v29 = vadd.f32 %v3077_v10, %v2115_v45  ;;  %v3094_v60 = vpop.permute.xlu2 %1608  ;;  %v1371_v45 = vmul.f32 %v1341_v51, %v3045_v14 }
 0x1dc   :  { %v3092_v61 = vpop.permute.xlu1 %1221 }
 0x1dd   :  { %v2179_v62 = vmax.f32 %v2149_v29, 0.0  ;;  %v435_v29 = vld [vmem:[#allocation2 + $0x1d] sm:$0xff] }
 0x1de   :  { %v495_v0 = vmul.f32 %v2822_v55, %v435_v29 }
 0x1df   :  { %v2208_v5 = vpack.c.bf16 %v2179_v62, %v2178_v57  ;;  %1231 = vrot.lane.b32.xlu0 %v1162_v4, %s2560_s28  ;;  %v944_v57 = vadd.f32 %v2906_v2, %v734_v41  ;;  %v1760_v62 = vmul.f32 %v1730_v48, %v2919_v9  ;;  %v1972_v2 = vmul.f32 %v1942_v39, %v3045_v14 }
 0x1e1   :  { %2488 = vmatmul.msk.bf16.vlgmr.msra.gmra.mxu2 %vm263_vm2, %v2208_v5  ;;  %v3099_v6 = vpop.permute.xlu0 %906  ;;  %1229 = vrot.lane.b32.xlu2 %v1161_v27, %s2560_s28  ;;  %v735_v5 = vadd.f32 %v3001_v12, %v495_v0 }
 0x1e2   :  { %2036 = vrot.lane.b32.xlu1 %v1970_v33, %s2565_s1  ;;  %v1125_v33 = vadd.f32 %v2935_v21, %v944_v57  ;;  %v774_v57 = vld [vmem:[#allocation2 + $0x67] sm:$0xff] }
 0x1e3   :  { %v3105_v11 = vpop.permute.xlu2 %1223  ;;  %v945_v18 = vadd.f32 %v2985_v63, %v735_v5  ;;  %v564_v63 = vld [vmem:[#allocation2 + $0x66] sm:$0xff]  ;;  %v804_v39 = vmul.f32 %v774_v57, %v3162_v17 }
 0x1e4   :  { %v3103_v8 = vpop.permute.xlu1 %1041  ;;  %v1305_v55 = vadd.f32 %v2921_v40, %v1125_v33 }
 0x1e5   :  { %v1126_v21 = vadd.f32 %v3025_v46, %v945_v18  ;;  %v3173_v46 = vld [vmem:[%s4117_s7 + $0x58] sm:$0xff] }
 0x1e6   :  { %v1515_v12 = vadd.f32 %v3068_v32, %v1305_v55  ;;  %v563_v32 = vld [vmem:[#allocation2 + $0x5e] sm:$0xff] }
 0x1e7   :  { %1051 = vrot.lane.b32.xlu0 %v982_v22, %s2561_s3  ;;  %v1971_v22 = vmul.f32 %v1941_v7, %v2976_v53  ;;  %v1306_v43 = vadd.f32 %v3010_v24, %v1126_v21  ;;  %v3194_v55 = vld [vmem:[#allocation2 + $0x61] sm:$0xff] }
 0x1e9   :  { %v3116_v26 = vpop.permute.xlu0 %2028  ;;  %1049 = vrot.lane.b32.xlu2 %v981_v23, %s2561_s3 }
 0x1ea   :  { %662 = vrot.lane.b32.xlu1 %v592_v20, %s2558_s24  ;;  %v1163_v20 = vld [vmem:[#allocation2 + $0x60] sm:$0xff] }
 0x1eb   :  { %v3120_v1 = vpop.permute.xlu2 %1043 }
 0x1ec   :  { %v1430_v49 = vpop.permute.xlu1 %1429 }
 0x1ef   :  { %1828 = vrot.lane.b32.xlu0 %v1761_v34, %s2564_s13  ;;  %v1696_v34 = vadd.f32 %v3094_v60, %v1515_v12  ;;  %v593_v60 = vmul.f32 %v563_v32, %v3173_v46  ;;  %v1732_v12 = vld [vmem:[#allocation2 + $0x5a] sm:$0xff] }
 0x1f1   :  { %v3126_v38 = vpop.permute.xlu0 %1087  ;;  %1437 = vrot.lane.b32.xlu2 %v1370_v37, %s2562_s11  ;;  %v594_v37 = vmul.f32 %v564_v63, %v3162_v17  ;;  %v1553_v63 = vmul.f32 %v3194_v55, %v3033_v54 }
 0x1f2   :  { %872 = vrot.lane.b32.xlu1 %v802_v36, %s2559_s25  ;;  %v773_v36 = vld [vmem:[#allocation2 + $0x5f] sm:$0xff] }
 0x1f3   :  { %v1821_v31 = vpop.permute.xlu2 %1820  ;;  %v983_v41 = vmul.f32 %v773_v36, %v3110_v15 }
 0x1f4   :  { %v1819_v44 = vpop.permute.xlu1 %1818 }
 0x1f5   :  { %v1906_v51 = vadd.f32 %v1819_v44, %v1696_v34  ;;  %v1342_v44 = vld [vmem:[#allocation2 + $0x59] sm:$0xff]  ;;  %v1762_v34 = vmul.f32 %v1732_v12, %v3045_v14 }
 0x1f6   :  { %v1372_v33 = vmul.f32 %v1342_v44, %v3033_v54 }
 0x1f7   :  { %1439 = vrot.lane.b32.xlu0 %v1371_v45, %s2562_s11  ;;  %v1516_v45 = vadd.f32 %v1430_v49, %v1306_v43  ;;  %v2116_v29 = vadd.f32 %v3116_v26, %v1906_v51  ;;  %v1165_v51 = vld [vmem:[#allocation2 + $0x70] sm:$0xff] }
 0x1f9   :  { %v3137_v25 = vpop.permute.xlu0 %654  ;;  %1826 = vrot.lane.b32.xlu2 %v1760_v62, %s2564_s13  ;;  %v2150_v49 = vadd.f32 %v3077_v10, %v2116_v29  ;;  %v775_v29 = vld [vmem:[#allocation2 + $0x6f] sm:$0xff] }
 0x1fa   :  { %1618 = vrot.lane.b32.xlu1 %v1551_v35, %s2563_s12 }
 0x1fb   :  { %v3146_v27 = vpop.permute.xlu2 %1431  ;;  %v2180_v18 = vmax.f32 %v2150_v49, 0.0 }
 0x1fc   :  { %v3142_v4 = vpop.permute.xlu1 %698 }
 0x1ff   :  { %2040 = vrot.lane.b32.xlu0 %v1972_v2, %s2565_s1  ;;  %v803_v2 = vmul.f32 %v773_v36, %v3173_v46  ;;  %v1552_v36 = vmul.f32 %v1342_v44, %v3045_v14  ;;  %v565_v44 = vld [vmem:[#allocation2 + $0x6e] sm:$0xff] }
 0x201   :  { %v3153_v23 = vpop.permute.xlu0 %864  ;;  %2038 = vrot.lane.b32.xlu2 %v1971_v22, %s2565_s1 }
 0x202   :  { %1233 = vrot.lane.b32.xlu1 %v1163_v20, %s2560_s28 }
 0x203   :  { %v3167_v30 = vpop.permute.xlu2 %700 }
 0x204   :  { %v3164_v40 = vpop.permute.xlu1 %908 }
 0x207   :  { %666 = vrot.lane.b32.xlu0 %v594_v37, %s2558_s24 }
 0x209   :  { %v1611_v48 = vpop.permute.xlu0 %1610  ;;  %664 = vrot.lane.b32.xlu2 %v593_v60, %s2558_s24 }
 0x20a   :  { %1053 = vrot.lane.b32.xlu1 %v983_v41, %s2561_s3  ;;  %v1697_v35 = vadd.f32 %v1611_v48, %v1516_v45  ;;  %v1943_v41 = vld [vmem:[#allocation2 + $0x63] sm:$0xff] }
 0x20b   :  { %v3182_v24 = vpop.permute.xlu2 %910  ;;  %v1973_v45 = vmul.f32 %v1943_v41, %v3033_v54  ;;  %v1164_v48 = vld [vmem:[#allocation2 + $0x68] sm:$0xff] }
 0x20c   :  { %v2031_v62 = vpop.permute.xlu1 %2030  ;;  %v1907_v0 = vadd.f32 %v1821_v31, %v1697_v35  ;;  %v437_v41 = vld [vmem:[#allocation2 + $0x2d] sm:$0xff] }
 0x20e   :  { %v2117_v5 = vadd.f32 %v2031_v62, %v1907_v0  ;;  %v3225_v0 = vld [vmem:[%s4117_s7 + $0x68] sm:$0xff] }
 0x20f   :  { %876 = vrot.lane.b32.xlu0 %v804_v39, %s2559_s25  ;;  %v985_v39 = vmul.f32 %v775_v29, %v3162_v17  ;;  %v595_v49 = vmul.f32 %v565_v44, %v3225_v0 }
 0x210   :  { %v2151_v26 = vadd.f32 %v3077_v10, %v2117_v5  ;;  %v984_v5 = vmul.f32 %v774_v57, %v3173_v46  ;;  %v805_v57 = vmul.f32 %v775_v29, %v3225_v0 }
 0x211   :  { %v3190_v7 = vpop.permute.xlu0 %1225  ;;  %874 = vrot.lane.b32.xlu2 %v803_v2, %s2559_s25  ;;  %v1344_v2 = vld [vmem:[#allocation2 + $0x69] sm:$0xff] }
 0x212   :  { %1441 = vrot.lane.b32.xlu1 %v1372_v33, %s2562_s11  ;;  %v2181_v31 = vmax.f32 %v2151_v26, 0.0  ;;  %v436_v33 = vld [vmem:[#allocation2 + $0x25] sm:$0xff]  ;;  %v1374_v12 = vmul.f32 %v1344_v2, %v3173_v46 }
 0x213   :  { %v3198_v20 = vpop.permute.xlu2 %2032 }
 0x214   :  { %v3196_v22 = vpop.permute.xlu1 %1089  ;;  %v2209_v21 = vpack.c.bf16 %v2181_v31, %v2180_v18  ;;  %v496_v18 = vmul.f32 %v2862_v28, %v436_v33 }
 0x216   :  { %2489 = vmatmul.msk.bf16.gmra.mxu2 %vm263_vm2, %v2209_v21 }
 0x217   :  { %1622 = vrot.lane.b32.xlu0 %v1553_v63, %s2563_s12  ;;  %v1733_v63 = vld [vmem:[#allocation2 + $0x62] sm:$0xff] }
 0x219   :  { %v3206_v37 = vpop.permute.xlu0 %1045  ;;  %1620 = vrot.lane.b32.xlu2 %v1552_v36, %s2563_s12 }
 0x21a   :  { %1830 = vrot.lane.b32.xlu1 %v1762_v34, %s2564_s13  ;;  %v736_v34 = vadd.f32 %v3003_v13, %v496_v18  ;;  %v497_v13 = vmul.f32 %v2888_v50, %v437_v41  ;;  %v1373_v18 = vmul.f32 %v3194_v55, %v3110_v15 }
 0x21b   :  { %v3212_v43 = vpop.permute.xlu2 %1091 }
 0x21c   :  { %v3210_v32 = vpop.permute.xlu1 %656  ;;  %v946_v36 = vadd.f32 %v3057_v16, %v736_v34  ;;  %v737_v16 = vadd.f32 %v3060_v19, %v497_v13  ;;  %v776_v13 = vld [vmem:[#allocation2 + $0x77] sm:$0xff] }
 0x21e   :  { %v1127_v28 = vadd.f32 %v3103_v8, %v946_v36  ;;  %v947_v8 = vadd.f32 %v3079_v42, %v737_v16 }
 0x21f   :  { %1237 = vrot.lane.b32.xlu0 %v1165_v51, %s2560_s28  ;;  %v1763_v51 = vmul.f32 %v1733_v63, %v3033_v54 }
 0x220   :  { %v1128_v50 = vadd.f32 %v3120_v1, %v947_v8  ;;  %v1166_v1 = vld [vmem:[#allocation2 + $0x78] sm:$0xff] }
 0x221   :  { %v1434_v60 = vpop.permute.xlu0 %1433  ;;  %1235 = vrot.lane.b32.xlu2 %v1164_v48, %s2560_s28  ;;  %v1734_v48 = vld [vmem:[#allocation2 + $0x6a] sm:$0xff] }
 0x222   :  { %2042 = vrot.lane.b32.xlu1 %v1973_v45, %s2565_s1  ;;  %v1764_v29 = vmul.f32 %v1734_v48, %v3110_v15  ;;  %v1308_v34 = vadd.f32 %v3105_v11, %v1128_v50  ;;  %v3278_v11 = vld [vmem:[%s4117_s7 + $0x78] sm:$0xff] }
 0x223   :  { %v3220_v62 = vpop.permute.xlu2 %658 }
 0x224   :  { %v3218_v35 = vpop.permute.xlu1 %866 }
 0x227   :  { %1057 = vrot.lane.b32.xlu0 %v985_v39, %s2561_s3 }
 0x229   :  { %v1823_v26 = vpop.permute.xlu0 %1822  ;;  %1055 = vrot.lane.b32.xlu2 %v984_v5, %s2561_s3  ;;  %v1554_v5 = vmul.f32 %v1344_v2, %v3110_v15 }
 0x22a   :  { %668 = vrot.lane.b32.xlu1 %v595_v49, %s2558_s24  ;;  %v1307_v49 = vadd.f32 %v3092_v61, %v1127_v28  ;;  %v1945_v61 = vld [vmem:[#allocation2 + $0x73] sm:$0xff] }
 0x22b   :  { %v3234_v21 = vpop.permute.xlu2 %868  ;;  %v1975_v42 = vmul.f32 %v1945_v61, %v3173_v46  ;;  %v3295_v61 = vld [vmem:[#allocation2 + $0x7f] sm:$0xff] }
 0x22c   :  { %v1613_v31 = vpop.permute.xlu1 %1612  ;;  %v1517_v33 = vadd.f32 %v3146_v27, %v1307_v49  ;;  %v1944_v27 = vld [vmem:[#allocation2 + $0x6b] sm:$0xff] }
 0x22d   :  { %v1974_v36 = vmul.f32 %v1944_v27, %v3110_v15 }
 0x22e   :  { %v1698_v19 = vadd.f32 %v1613_v31, %v1517_v33 }
 0x22f   :  { %1445 = vrot.lane.b32.xlu0 %v1374_v12, %s2562_s11 }
 0x230   :  { %v1908_v55 = vadd.f32 %v1823_v26, %v1698_v19  ;;  %v567_v26 = vld [vmem:[#allocation2 + $0x7e] sm:$0xff] }
 0x231   :  { %v2035_v45 = vpop.permute.xlu0 %2034  ;;  %1832 = vrot.lane.b32.xlu2 %v1763_v51, %s2564_s13 }
 0x232   :  { %878 = vrot.lane.b32.xlu1 %v805_v57, %s2559_s25  ;;  %v1518_v57 = vadd.f32 %v1434_v60, %v1308_v34  ;;  %v2118_v51 = vadd.f32 %v3198_v20, %v1908_v55  ;;  %v3286_v20 = vld [vmem:[%s4117_s7 + $0x70] sm:$0xff]  ;;  %v807_v55 = vmul.f32 %v3295_v61, %v3278_v11 }
 0x233   :  { %v1615_v39 = vpop.permute.xlu2 %1614  ;;  %v1735_v34 = vld [vmem:[#allocation2 + $0x72] sm:$0xff] }
 0x234   :  { %v3245_v44 = vpop.permute.xlu1 %1227  ;;  %v1699_v41 = vadd.f32 %v1615_v39, %v1518_v57  ;;  %v566_v39 = vld [vmem:[#allocation2 + $0x76] sm:$0xff]  ;;  %v2152_v49 = vadd.f32 %v3077_v10, %v2118_v51  ;;  %v1765_v57 = vmul.f32 %v1735_v34, %v3173_v46 }
 0x235   :  { %v596_v33 = vmul.f32 %v566_v39, %v3286_v20  ;;  %v3309_v51 = vld [vmem:[#allocation2 + $0x79] sm:$0xff] }
 0x236   :  { %v2182_v50 = vmax.f32 %v2152_v49, 0.0  ;;  %v1946_v34 = vld [vmem:[#allocation2 + $0x7b] sm:$0xff] }
 0x237   :  { %1834 = vrot.lane.b32.xlu0 %v1764_v29, %s2564_s13  ;;  %v597_v29 = vmul.f32 %v567_v26, %v3278_v11 }
 0x239   :  { %v3257_v12 = vpop.permute.xlu0 %660  ;;  %1443 = vrot.lane.b32.xlu2 %v1373_v18, %s2562_s11 }
 0x23a   :  { %1624 = vrot.lane.b32.xlu1 %v1554_v5, %s2563_s12  ;;  %v986_v5 = vmul.f32 %v776_v13, %v3225_v0 }
 0x23b   :  { %v3264_v2 = vpop.permute.xlu2 %1229 }
 0x23c   :  { %v3262_v63 = vpop.permute.xlu1 %1047 }
 0x23f   :  { %2046 = vrot.lane.b32.xlu0 %v1975_v42, %s2565_s1 }
 0x241   :  { %v3270_v31 = vpop.permute.xlu0 %870  ;;  %2044 = vrot.lane.b32.xlu2 %v1974_v36, %s2565_s1  ;;  %v806_v36 = vmul.f32 %v776_v13, %v3286_v20 }
 0x242   :  { %1239 = vrot.lane.b32.xlu1 %v1166_v1, %s2560_s28 }
 0x243   :  { %v3280_v48 = vpop.permute.xlu2 %1049 }
 0x244   :  { %v1825_v28 = vpop.permute.xlu1 %1824 }
 0x245   :  { %v1909_v60 = vadd.f32 %v1825_v28, %v1699_v41  ;;  %v438_v41 = vld [vmem:[#allocation2 + $0x35] sm:$0xff] }
 0x246   :  { %v498_v39 = vmul.f32 %v2919_v9, %v438_v41  ;;  %v3325_v9 = vld [vmem:[#allocation2 + $0x91] sm:$0xff] }
 0x247   :  { %v2119_v16 = vadd.f32 %v2035_v45, %v1909_v60  ;;  %672 = vrot.lane.b32.xlu0 %v597_v29, %s2558_s24  ;;  %v1345_v60 = vld [vmem:[#allocation2 + $0x71] sm:$0xff]  ;;  %v1556_v29 = vmul.f32 %v3309_v51, %v3162_v17 }
 0x248   :  { %v1375_v13 = vmul.f32 %v1345_v60, %v3162_v17  ;;  %v1555_v49 = vmul.f32 %v1345_v60, %v3173_v46  ;;  %v3345_v60 = vld [vmem:[%s4120_s6] ss:$0 sm:$0xff] }
 0x249   :  { %v2153_v8 = vadd.f32 %v3077_v10, %v2119_v16  ;;  %v1617_v18 = vpop.permute.xlu0 %1616  ;;  %670 = vrot.lane.b32.xlu2 %v596_v33, %s2558_s24  ;;  %v738_v16 = vadd.f32 %v3137_v25, %v498_v39  ;;  %v439_v33 = vld [vmem:[#allocation2 + $0x3d] sm:$0xff] }
 0x24a   :  { %1059 = vrot.lane.b32.xlu1 %v986_v5, %s2561_s3  ;;  %v3331_v25 = vld [vmem:[%s4117_s7 + $0x80] sm:$0xff] }
 0x24b   :  { %v2183_v19 = vmax.f32 %v2153_v8, 0.0  ;;  %v3297_v42 = vpop.permute.xlu2 %1437  ;;  %v948_v8 = vadd.f32 %v3153_v23, %v738_v16  ;;  %v3336_v23 = vmul.f32 %v3325_v9, %v3331_v25  ;;  %v778_v16 = vld [vmem:[#allocation2 + $0x87] sm:$0xff] }
 0x24c   :  { %v1436_v45 = vpop.permute.xlu1 %1435 }
 0x24d   :  { %v2210_v27 = vpack.c.bf16 %v2183_v19, %v2182_v50  ;;  %v1129_v19 = vadd.f32 %v3206_v37, %v948_v8 }
 0x24f   :  { %2490 = vmatmul.msk.bf16.gmra.mxu2 %vm263_vm2, %v2210_v27  ;;  %882 = vrot.lane.b32.xlu0 %v807_v55, %s2559_s25  ;;  %v499_v55 = vmul.f32 %v2976_v53, %v439_v33  ;;  %v1309_v41 = vadd.f32 %v3190_v7, %v1129_v19  ;;  %v1167_v53 = vld [vmem:[#allocation2 + $0x80] sm:$0xff] }
 0x250   :  { %v568_v19 = vld [vmem:[#allocation2 + $0x86] sm:$0xff] }
 0x251   :  { %v3305_v1 = vpop.permute.xlu0 %1231  ;;  %880 = vrot.lane.b32.xlu2 %v806_v36, %s2559_s25  ;;  %v1976_v36 = vmul.f32 %v1946_v34, %v3162_v17  ;;  %v739_v37 = vadd.f32 %v3210_v32, %v499_v55  ;;  %v988_v34 = vmul.f32 %v778_v16, %v3278_v11 }
 0x252   :  { %1836 = vrot.lane.b32.xlu1 %v1765_v57, %s2564_s13  ;;  %v1168_v57 = vld [vmem:[#allocation2 + $0x88] sm:$0xff] }
 0x253   :  { %v1827_v28 = vpop.permute.xlu2 %1826  ;;  %v949_v39 = vadd.f32 %v3218_v35, %v739_v37  ;;  %v2519_v35 = vld [vmem:[%s4114_s0] sm:$0xff] }
 0x254   :  { %v2037_v26 = vpop.permute.xlu1 %2036 }
 0x255   :  { %v1130_v7 = vadd.f32 %v3262_v63, %v949_v39  ;;  %v1737_v39 = vld [vmem:[#allocation2 + $0x82] sm:$0xff] }
 0x257   :  { %1628 = vrot.lane.b32.xlu0 %v1556_v29, %s2563_s12 }
 0x259   :  { %v3318_v5 = vpop.permute.xlu0 %1051  ;;  %1626 = vrot.lane.b32.xlu2 %v1555_v49, %s2563_s12 }
 0x25a   :  { %1447 = vrot.lane.b32.xlu1 %v1375_v13, %s2562_s11  ;;  %v1519_v13 = vadd.f32 %v1436_v45, %v1309_v41  ;;  %v987_v41 = vmul.f32 %v3295_v61, %v3286_v20 }
 0x25b   :  { %v2039_v27 = vpop.permute.xlu2 %2038 }
 0x25c   :  { %v3323_v50 = vpop.permute.xlu1 %662  ;;  %v1700_v55 = vadd.f32 %v1617_v18, %v1519_v13 }
 0x25e   :  { %v1910_v63 = vadd.f32 %v1827_v28, %v1700_v55  ;;  %v808_v55 = vmul.f32 %v778_v16, %v3331_v25 }
 0x25f   :  { %1243 = vrot.lane.b32.xlu0 %v1168_v57, %s2560_s28  ;;  %v598_v57 = vmul.f32 %v568_v19, %v3331_v25 }
 0x260   :  { %v2120_v13 = vadd.f32 %v2037_v26, %v1910_v63 }
 0x261   :  { %v1829_v29 = vpop.permute.xlu0 %1828  ;;  %1241 = vrot.lane.b32.xlu2 %v1167_v53, %s2560_s28 }
 0x262   :  { %2048 = vrot.lane.b32.xlu1 %v1976_v36, %s2565_s1  ;;  %v1310_v36 = vadd.f32 %v3245_v44, %v1130_v7 }
 0x263   :  { %v3354_v33 = vpop.permute.xlu2 %664 }
 0x264   :  { %v2285_v49 = vpop.f32.mrf.mxu2  ;;  %v3350_v8 = vpop.permute.xlu1 %872  ;;  %v1520_v18 = vadd.f32 %v3297_v42, %v1310_v36  ;;  %v2520_v42 = vld [vmem:[%s4114_s0 + $0x8] sm:$0xff] }
 0x265   :  { %v2286_v32 = vadd.f32 %v3345_v60, %v2285_v49 }
 0x267   :  { %v2360_v45 = vadd.f32 %v2519_v35, %v2286_v32  ;;  %1063 = vrot.lane.b32.xlu0 %v988_v34, %s2561_s3  ;;  %v1767_v32 = vmul.f32 %v1737_v39, %v3225_v0  ;;  %v2154_v35 = vadd.f32 %v3077_v10, %v2120_v13  ;;  %v1736_v39 = vld [vmem:[#allocation2 + $0x7a] sm:$0xff] }
 0x269   :  { %v2390_v37 = vmax.f32 %v2360_v45, 0.0  ;;  %v3365_v53 = vpop.permute.xlu0 %1439  ;;  %1061 = vrot.lane.b32.xlu2 %v987_v41, %s2561_s3 }
 0x26a   :  { %674 = vrot.lane.b32.xlu1 %v598_v57, %s2558_s24  ;;  %v1376_v57 = vmul.f32 %v3309_v51, %v3225_v0 }
 0x26b   :  { %2420 = vst.msk [vmem:[%s4121_s8] sm:$0xff] %vm87_vm0, %v2390_v37  ;;  %v3375_v7 = vpop.permute.xlu2 %874  ;;  %v2184_v37 = vmax.f32 %v2154_v35, 0.0 }
 0x26c   :  { %v2287_v44 = vpop.f32.mrf.mxu2  ;;  %v1619_v28 = vpop.permute.xlu1 %1618 }
 0x26d   :  { %v2288_v49 = vadd.f32 %v3345_v60, %v2287_v44  ;;  %v1701_v61 = vadd.f32 %v1619_v28, %v1520_v18  ;;  %v444_v18 = vld [vmem:[#allocation2 + $0x65] sm:$0xff] }
 0x26e   :  { %v504_v13 = vmul.f32 %v3162_v17, %v444_v18 }
 0x26f   :  { %v2361_v19 = vadd.f32 %v2520_v42, %v2288_v49  ;;  %v1911_v34 = vadd.f32 %v1829_v29, %v1701_v61  ;;  %1840 = vrot.lane.b32.xlu0 %v1767_v32, %s2564_s13  ;;  %v1347_v29 = vld [vmem:[#allocation2 + $0x81] sm:$0xff]  ;;  %v1766_v49 = vmul.f32 %v1736_v39, %v3162_v17  ;;  %v441_v17 = vld [vmem:[#allocation2 + $0x4d] sm:$0xff] }
 0x270   :  { %v1377_v51 = vmul.f32 %v1347_v29, %v3286_v20  ;;  %v1557_v28 = vmul.f32 %v1347_v29, %v3225_v0  ;;  %v440_v61 = vld [vmem:[#allocation2 + $0x45] sm:$0xff] }
 0x271   :  { %v2391_v26 = vmax.f32 %v2361_v19, 0.0  ;;  %v2121_v45 = vadd.f32 %v2039_v27, %v1911_v34  ;;  %v3386_v36 = vpop.permute.xlu0 %2040  ;;  %1449 = vrot.lane.b32.xlu2 %v1376_v57, %s2562_s11  ;;  %v3408_v19 = vld [vmem:[%s4117_s7 + $0x90] sm:$0xff]  ;;  %v500_v35 = vmul.f32 %v3045_v14, %v440_v61  ;;  %v1947_v57 = vld [vmem:[#allocation2 + $0x83] sm:$0xff] }
 0x272   :  { %884 = vrot.lane.b32.xlu1 %v808_v55, %s2559_s25  ;;  %v570_v34 = vld [vmem:[#allocation2 + $0x96] sm:$0xff] }
 0x273   :  { %2421 = vst.msk [vmem:[%s4121_s8 + $0x8] sm:$0xff] %vm87_vm0, %v2391_v26  ;;  %v2155_v16 = vadd.f32 %v3077_v10, %v2121_v45  ;;  %v1621_v27 = vpop.permute.xlu2 %1620  ;;  %v600_v45 = vmul.f32 %v570_v34, %v3408_v19  ;;  %v740_v29 = vadd.f32 %v3220_v62, %v500_v35  ;;  %v3425_v62 = vld [vmem:[#allocation2 + $0x97] sm:$0xff] }
 0x274   :  { %v3395_v63 = vpop.permute.xlu1 %1233 }
 0x275   :  { %v2185_v41 = vmax.f32 %v2155_v16, 0.0  ;;  %v950_v16 = vadd.f32 %v3234_v21, %v740_v29 }
 0x277   :  { %v2211_v44 = vpack.c.bf16 %v2185_v41, %v2184_v37  ;;  %1451 = vrot.lane.b32.xlu0 %v1377_v51, %s2562_s11  ;;  %v501_v37 = vmul.f32 %v3033_v54, %v441_v17  ;;  %v1977_v41 = vmul.f32 %v1947_v57, %v3225_v0  ;;  %v1169_v51 = vld [vmem:[#allocation2 + $0x90] sm:$0xff]  ;;  %v1131_v39 = vadd.f32 %v3280_v48, %v950_v16 }
 0x278   :  { %v779_v54 = vld [vmem:[#allocation2 + $0x8f] sm:$0xff] }
 0x279   :  { %2491 = vmatmul.msk.bf16.gmra.mxu2 %vm263_vm2, %v2211_v44  ;;  %v667_v32 = vpop.permute.xlu0 %666  ;;  %1838 = vrot.lane.b32.xlu2 %v1766_v49, %s2564_s13  ;;  %v741_v14 = vadd.f32 %v3257_v12, %v501_v37  ;;  %v3433_v49 = vld [vmem:[%s4117_s7 + $0x88] sm:$0xff]  ;;  %v810_v12 = vmul.f32 %v3425_v62, %v3408_v19  ;;  %v1559_v37 = vmul.f32 %v3325_v9, %v3278_v11 }
 0x27a   :  { %1630 = vrot.lane.b32.xlu1 %v1557_v28, %s2563_s12  ;;  %v744_v42 = vadd.f32 %v667_v32, %v504_v13  ;;  %v569_v48 = vld [vmem:[#allocation2 + $0x8e] sm:$0xff]  ;;  %v1311_v32 = vadd.f32 %v3264_v2, %v1131_v39 }
 0x27b   :  { %v3413_v26 = vpop.permute.xlu2 %1235  ;;  %v951_v21 = vadd.f32 %v3270_v31, %v741_v14  ;;  %v989_v31 = vmul.f32 %v779_v54, %v3331_v25  ;;  %v599_v34 = vmul.f32 %v569_v48, %v3433_v49  ;;  %v1348_v16 = vld [vmem:[#allocation2 + $0x89] sm:$0xff] }
 0x27c   :  { %v3410_v55 = vpop.permute.xlu1 %1053 }
 0x27d   :  { %v1132_v61 = vadd.f32 %v3318_v5, %v951_v21  ;;  %v1171_v21 = vld [vmem:[#allocation2 + $0xa0] sm:$0xff] }
 0x27f   :  { %678 = vrot.lane.b32.xlu0 %v600_v45, %s2558_s24  ;;  %v1312_v45 = vadd.f32 %v3305_v1, %v1132_v61 }
 0x281   :  { %v877_v18 = vpop.permute.xlu0 %876  ;;  %2050 = vrot.lane.b32.xlu2 %v1977_v41, %s2565_s1 }
 0x282   :  { %1245 = vrot.lane.b32.xlu1 %v1169_v51, %s2560_s28  ;;  %v954_v44 = vadd.f32 %v877_v18, %v744_v42  ;;  %v1521_v42 = vadd.f32 %v3365_v53, %v1311_v32  ;;  %v1378_v53 = vmul.f32 %v1348_v16, %v3278_v11  ;;  %v1558_v32 = vmul.f32 %v1348_v16, %v3286_v20 }
 0x283   :  { %v3428_v13 = vpop.permute.xlu2 %1055 }
 0x284   :  { %v1442_v28 = vpop.permute.xlu1 %1441  ;;  %v1702_v17 = vadd.f32 %v1621_v27, %v1521_v42  ;;  %v809_v27 = vmul.f32 %v779_v54, %v3433_v49 }
 0x285   :  { %v1522_v5 = vadd.f32 %v1442_v28, %v1312_v45  ;;  %v781_v45 = vld [vmem:[#allocation2 + $0x9f] sm:$0xff] }
 0x287   :  { %888 = vrot.lane.b32.xlu0 %v810_v12, %s2559_s25  ;;  %v1738_v12 = vld [vmem:[#allocation2 + $0x8a] sm:$0xff] }
 0x289   :  { %v1623_v35 = vpop.permute.xlu0 %1622  ;;  %676 = vrot.lane.b32.xlu2 %v599_v34, %s2558_s24 }
 0x28a   :  { %1065 = vrot.lane.b32.xlu1 %v989_v31, %s2561_s3  ;;  %v1703_v41 = vadd.f32 %v1623_v35, %v1522_v5 }
 0x28b   :  { %v1833_v2 = vpop.permute.xlu2 %1832 }
 0x28c   :  { %v1831_v57 = vpop.permute.xlu1 %1830  ;;  %v1913_v18 = vadd.f32 %v1833_v2, %v1703_v41  ;;  %v3473_v2 = vld [vmem:[%s4117_s7 + $0x98] sm:$0xff]  ;;  %v991_v41 = vmul.f32 %v781_v45, %v3408_v19 }
 0x28d   :  { %v1912_v29 = vadd.f32 %v1831_v57, %v1702_v17  ;;  %v2521_v57 = vld [vmem:[%s4114_s0 + $0x10] sm:$0xff] }
 0x28f   :  { %1634 = vrot.lane.b32.xlu0 %v1559_v37, %s2563_s12  ;;  %v2122_v51 = vadd.f32 %v3386_v36, %v1912_v29  ;;  %v1768_v36 = vmul.f32 %v1738_v12, %v3286_v20  ;;  %v445_v37 = vld [vmem:[#allocation2 + $0x6d] sm:$0xff] }
 0x290   :  { %v3493_v12 = vld [vmem:[%s4117_s7 + $0xa8] sm:$0xff] }
 0x291   :  { %v1238_v1 = vpop.permute.xlu0 %1237  ;;  %886 = vrot.lane.b32.xlu2 %v809_v27, %s2559_s25  ;;  %v2156_v39 = vadd.f32 %v3077_v10, %v2122_v51  ;;  %v505_v27 = vmul.f32 %v3225_v0, %v445_v37 }
 0x292   :  { %1453 = vrot.lane.b32.xlu1 %v1378_v53, %s2562_s11 }
 0x293   :  { %v3455_v9 = vpop.permute.xlu2 %1443  ;;  %v2186_v54 = vmax.f32 %v2156_v39, 0.0 }
 0x294   :  { %v2043_v14 = vpop.permute.xlu1 %2042 }
 0x295   :  { %v2123_v28 = vadd.f32 %v2043_v14, %v1913_v18  ;;  %v446_v18 = vld [vmem:[#allocation2 + $0x75] sm:$0xff] }
 0x296   :  { %v506_v0 = vmul.f32 %v3286_v20, %v446_v18 }
 0x297   :  { %v2157_v48 = vadd.f32 %v3077_v10, %v2123_v28  ;;  %1249 = vrot.lane.b32.xlu0 %v1171_v21, %s2560_s28 }
 0x299   :  { %v2187_v61 = vmax.f32 %v2157_v48, 0.0  ;;  %v2290_v31 = vpop.f32.mrf.mxu2  ;;  %v1058_v42 = vpop.permute.xlu0 %1057  ;;  %1632 = vrot.lane.b32.xlu2 %v1558_v32, %s2563_s12  ;;  %v573_v48 = vld [vmem:[#allocation2 + $0xae] sm:$0xff] }
 0x29a   :  { %1842 = vrot.lane.b32.xlu1 %v1768_v36, %s2564_s13  ;;  %v2291_v34 = vadd.f32 %v3345_v60, %v2290_v31  ;;  %v1135_v35 = vadd.f32 %v1058_v42, %v954_v44  ;;  %v571_v44 = vld [vmem:[#allocation2 + $0x9e] sm:$0xff] }
 0x29b   :  { %v2212_v17 = vpack.c.bf16 %v2187_v61, %v2186_v54  ;;  %v3467_v29 = vpop.permute.xlu2 %2044  ;;  %v601_v51 = vmul.f32 %v571_v44, %v3473_v2  ;;  %v2522_v54 = vld [vmem:[%s4114_s0 + $0x18] sm:$0xff]  ;;  %v3512_v44 = vld [vmem:[#allocation2 + $0xaf] sm:$0xff] }
 0x29c   :  { %v669_v10 = vpop.permute.xlu1 %668  ;;  %v2362_v5 = vadd.f32 %v2521_v57, %v2291_v34  ;;  %v3475_v16 = vadd.f32 %v1238_v1, %v1135_v35  ;;  %v1170_v1 = vld [vmem:[#allocation2 + $0x98] sm:$0xff]  ;;  %v603_v34 = vmul.f32 %v573_v48, %v3493_v12 }
 0x29d   :  { %2492 = vmatmul.msk.bf16.gmra.mxu2 %vm263_vm2, %v2212_v17  ;;  %v745_v28 = vadd.f32 %v669_v10, %v505_v27  ;;  %v811_v17 = vmul.f32 %v781_v45, %v3473_v2  ;;  %v990_v10 = vmul.f32 %v3425_v62, %v3433_v49  ;;  %v442_v57 = vld [vmem:[#allocation2 + $0x55] sm:$0xff]  ;;  %v813_v62 = vmul.f32 %v3512_v44, %v3493_v12 }
 0x29e   :  { %v2392_v53 = vmax.f32 %v2362_v5, 0.0 }
 0x29f   :  { %1069 = vrot.lane.b32.xlu0 %v991_v41, %s2561_s3  ;;  %v502_v41 = vmul.f32 %v3110_v15, %v442_v57 }
 0x2a0   :  { %2422 = vst.msk [vmem:[%s4121_s8 + $0x10] sm:$0xff] %vm87_vm0, %v2392_v53 }
 0x2a1   :  { %v2292_v14 = vpop.f32.mrf.mxu2  ;;  %v3485_v39 = vpop.permute.xlu0 %1445  ;;  %1247 = vrot.lane.b32.xlu2 %v1170_v1, %s2560_s28  ;;  %v742_v27 = vadd.f32 %v3323_v50, %v502_v41  ;;  %v1172_v1 = vld [vmem:[#allocation2 + $0xa8] sm:$0xff] }
 0x2a2   :  { %680 = vrot.lane.b32.xlu1 %v601_v51, %s2558_s24  ;;  %v2293_v21 = vadd.f32 %v3345_v60, %v2292_v14  ;;  %v1739_v51 = vld [vmem:[#allocation2 + $0x92] sm:$0xff] }
 0x2a3   :  { %v671_v31 = vpop.permute.xlu2 %670  ;;  %v952_v18 = vadd.f32 %v3350_v8, %v742_v27  ;;  %v1769_v14 = vmul.f32 %v1739_v51, %v3278_v11  ;;  %v3530_v8 = vld [vmem:[%s4117_s7 + $0xa0] sm:$0xff] }
 0x2a4   :  { %v879_v36 = vpop.permute.xlu1 %878  ;;  %v2363_v61 = vadd.f32 %v2522_v54, %v2293_v21  ;;  %v746_v42 = vadd.f32 %v671_v31, %v506_v0  ;;  %v782_v0 = vld [vmem:[#allocation2 + $0xa7] sm:$0xff] }
 0x2a5   :  { %v3499_v32 = vadd.f32 %v879_v36, %v745_v28  ;;  %v443_v28 = vld [vmem:[#allocation2 + $0x5d] sm:$0xff]  ;;  %v1133_v15 = vadd.f32 %v3410_v55, %v952_v18  ;;  %v572_v54 = vld [vmem:[#allocation2 + $0xa6] sm:$0xff]  ;;  %v992_v55 = vmul.f32 %v782_v0, %v3473_v2 }
 0x2a6   :  { %v2393_v35 = vmax.f32 %v2363_v61, 0.0  ;;  %v503_v36 = vmul.f32 %v3173_v46, %v443_v28  ;;  %v576_v28 = vld [vmem:[#allocation2 + $0xc6] sm:$0xff] }
 0x2a7   :  { %684 = vrot.lane.b32.xlu0 %v603_v34, %s2558_s24  ;;  %v1313_v31 = vadd.f32 %v3395_v63, %v1133_v15  ;;  %v447_v63 = vld [vmem:[#allocation2 + $0x7d] sm:$0xff] }
 0x2a8   :  { %2423 = vst.msk [vmem:[%s4121_s8 + $0x18] sm:$0xff] %vm87_vm0, %v2393_v35  ;;  %v743_v61 = vadd.f32 %v3354_v33, %v503_v36  ;;  %v602_v35 = vmul.f32 %v572_v54, %v3530_v8  ;;  %v784_v33 = vld [vmem:[#allocation2 + $0xb7] sm:$0xff]  ;;  %v507_v27 = vmul.f32 %v3278_v11, %v447_v63  ;;  %v3562_v54 = vld [vmem:[%s4117_s7 + $0xc0] sm:$0xff] }
 0x2a9   :  { %v1835_v5 = vpop.permute.xlu0 %1834  ;;  %1067 = vrot.lane.b32.xlu2 %v990_v10, %s2561_s3  ;;  %v1523_v46 = vadd.f32 %v3455_v9, %v1313_v31 }
 0x2aa   :  { %890 = vrot.lane.b32.xlu1 %v811_v17, %s2559_s25  ;;  %v953_v34 = vadd.f32 %v3375_v7, %v743_v61  ;;  %v994_v7 = vmul.f32 %v784_v33, %v3493_v12 }
 0x2ab   :  { %v881_v45 = vpop.permute.xlu2 %880 }
 0x2ac   :  { %v1625_v37 = vpop.permute.xlu1 %1624  ;;  %v956_v53 = vadd.f32 %v881_v45, %v746_v42  ;;  %v1174_v42 = vld [vmem:[#allocation2 + $0xb8] sm:$0xff]  ;;  %v1134_v10 = vadd.f32 %v3428_v13, %v953_v34  ;;  %v3550_v13 = vld [vmem:[%s4117_s7 + $0xb0] sm:$0xff] }
 0x2ad   :  { %v1704_v57 = vadd.f32 %v1625_v37, %v1523_v46  ;;  %v814_v34 = vmul.f32 %v784_v33, %v3550_v13 }
 0x2ae   :  { %v1314_v9 = vadd.f32 %v3413_v26, %v1134_v10  ;;  %v1173_v10 = vld [vmem:[#allocation2 + $0xb0] sm:$0xff] }
 0x2af   :  { %894 = vrot.lane.b32.xlu0 %v813_v62, %s2559_s25  ;;  %v574_v62 = vld [vmem:[#allocation2 + $0xb6] sm:$0xff]  ;;  %v1914_v51 = vadd.f32 %v1835_v5, %v1704_v57  ;;  %v3580_v57 = vld [vmem:[#allocation2 + $0xc7] sm:$0xff] }
 0x2b0   :  { %v604_v37 = vmul.f32 %v574_v62, %v3550_v13  ;;  %v1524_v18 = vadd.f32 %v3485_v39, %v1314_v9  ;;  %v606_v39 = vmul.f32 %v576_v28, %v3562_v54  ;;  %v816_v33 = vmul.f32 %v3580_v57, %v3562_v54  ;;  %v1175_v9 = vld [vmem:[#allocation2 + $0xc0] sm:$0xff] }
 0x2b1   :  { %v2047_v21 = vpop.permute.xlu0 %2046  ;;  %1844 = vrot.lane.b32.xlu2 %v1769_v14, %s2564_s13  ;;  %v2124_v26 = vadd.f32 %v3467_v29, %v1914_v51  ;;  %v3568_v29 = vld [vmem:[%s4118_s4] ss:$0 sm:$0xff] }
 0x2b2   :  { %1251 = vrot.lane.b32.xlu1 %v1172_v1, %s2560_s28  ;;  %v812_v1 = vmul.f32 %v782_v0, %v3530_v8 }
 0x2b3   :  { %v1627_v50 = vpop.permute.xlu2 %1626 }
 0x2b4   :  { %v3524_v48 = vpop.permute.xlu1 %1239  ;;  %v1705_v5 = vadd.f32 %v1627_v50, %v1524_v18  ;;  %v2158_v50 = vadd.f32 %v3568_v29, %v2124_v26  ;;  %v787_v18 = vld [vmem:[#allocation2 + $0xcf] sm:$0xff]  ;;  %v785_v26 = vld [vmem:[#allocation2 + $0xbf] sm:$0xff] }
 0x2b7   :  { %1255 = vrot.lane.b32.xlu0 %v1174_v42, %s2560_s28 }
 0x2b9   :  { %v673_v17 = vpop.permute.xlu0 %672  ;;  %682 = vrot.lane.b32.xlu2 %v602_v35, %s2558_s24 }
 0x2ba   :  { %1071 = vrot.lane.b32.xlu1 %v992_v55, %s2561_s3  ;;  %v747_v14 = vadd.f32 %v673_v17, %v507_v27 }
 0x2bb   :  { %v1242_v45 = vpop.permute.xlu2 %1241 }
 0x2bc   :  { %v3542_v41 = vpop.permute.xlu1 %1059 }
 0x2bf   :  { %1075 = vrot.lane.b32.xlu0 %v994_v7, %s2561_s3 }
 0x2c1   :  { %v883_v15 = vpop.permute.xlu0 %882  ;;  %892 = vrot.lane.b32.xlu2 %v812_v1, %s2559_s25  ;;  %v2524_v1 = vld [vmem:[%s4114_s0 + $0x20] sm:$0xff] }
 0x2c2   :  { %686 = vrot.lane.b32.xlu1 %v604_v37, %s2558_s24  ;;  %v957_v36 = vadd.f32 %v883_v15, %v747_v14 }
 0x2c3   :  { %v1062_v0 = vpop.permute.xlu2 %1061 }
 0x2c4   :  { %v1837_v61 = vpop.permute.xlu1 %1836  ;;  %v1137_v42 = vadd.f32 %v1062_v0, %v956_v53  ;;  %v448_v0 = vld [vmem:[#allocation2 + $0x85] sm:$0xff] }
 0x2c5   :  { %v1915_v31 = vadd.f32 %v1837_v61, %v1705_v5  ;;  %v575_v5 = vld [vmem:[#allocation2 + $0xbe] sm:$0xff] }
 0x2c6   :  { %v3573_v46 = vadd.f32 %v1242_v45, %v1137_v42  ;;  %v993_v45 = vmul.f32 %v3512_v44, %v3530_v8  ;;  %v997_v44 = vmul.f32 %v787_v18, %v3562_v54 }
 0x2c7   :  { %v2125_v55 = vadd.f32 %v2047_v21, %v1915_v31  ;;  %690 = vrot.lane.b32.xlu0 %v606_v39, %s2558_s24  ;;  %v2188_v21 = vmax.f32 %v2158_v50, 0.0  ;;  %v995_v39 = vmul.f32 %v785_v26, %v3550_v13  ;;  %v3602_v31 = vld [vmem:[%s4117_s7 + $0xb8] sm:$0xff] }
 0x2c8   :  { %v605_v42 = vmul.f32 %v575_v5, %v3602_v31 }
 0x2c9   :  { %v2159_v35 = vadd.f32 %v3568_v29, %v2125_v55  ;;  %v3576_v17 = vpop.permute.xlu0 %1628  ;;  %1253 = vrot.lane.b32.xlu2 %v1173_v10, %s2560_s28  ;;  %v508_v10 = vmul.f32 %v3331_v25, %v448_v0  ;;  %v1136_v0 = vadd.f32 %v3542_v41, %v3499_v32 }
 0x2ca   :  { %896 = vrot.lane.b32.xlu1 %v814_v34, %s2559_s25 }
 0x2cb   :  { %v2189_v53 = vmax.f32 %v2159_v35, 0.0  ;;  %v3582_v62 = vpop.permute.xlu2 %1449 }
 0x2cc   :  { %v1448_v63 = vpop.permute.xlu1 %1447 }
 0x2cd   :  { %v2213_v7 = vpack.c.bf16 %v2189_v53, %v2188_v21  ;;  %v1948_v53 = vld [vmem:[#allocation2 + $0x8b] sm:$0xff] }
 0x2cf   :  { %2493 = vmatmul.msk.bf16.gmra.mxu2 %vm263_vm2, %v2213_v7  ;;  %900 = vrot.lane.b32.xlu0 %v816_v33, %s2559_s25  ;;  %v2525_v7 = vld [vmem:[%s4114_s0 + $0x28] sm:$0xff] }
 0x2d1   :  { %v1244_v27 = vpop.permute.xlu0 %1243  ;;  %1073 = vrot.lane.b32.xlu2 %v993_v45, %s2561_s3 }
 0x2d2   :  { %v2295_v51 = vpop.f32.mrf.mxu2  ;;  %1257 = vrot.lane.b32.xlu1 %v1175_v9, %s2560_s28 }
 0x2d3   :  { %v2296_v37 = vadd.f32 %v3345_v60, %v2295_v51  ;;  %v1839_v15 = vpop.permute.xlu2 %1838  ;;  %v577_v51 = vld [vmem:[#allocation2 + $0xce] sm:$0xff] }
 0x2d4   :  { %v2049_v14 = vpop.permute.xlu1 %2048 }
 0x2d5   :  { %v2364_v28 = vadd.f32 %v2524_v1, %v2296_v37  ;;  %v1978_v1 = vmul.f32 %v1948_v53, %v3286_v20  ;;  %v1525_v20 = vadd.f32 %v1448_v63, %v3475_v16  ;;  %v1316_v16 = vadd.f32 %v3524_v48, %v1136_v0  ;;  %v1949_v48 = vld [vmem:[#allocation2 + $0x93] sm:$0xff] }
 0x2d7   :  { %v2394_v61 = vmax.f32 %v2364_v28, 0.0  ;;  %1081 = vrot.lane.b32.xlu0 %v997_v44, %s2561_s3  ;;  %v1526_v32 = vadd.f32 %v3582_v62, %v1316_v16  ;;  %v1979_v62 = vmul.f32 %v1949_v48, %v3278_v11 }
 0x2d9   :  { %2424 = vst.msk [vmem:[%s4121_s8 + $0x20] sm:$0xff] %vm87_vm0, %v2394_v61  ;;  %v1064_v50 = vpop.permute.xlu0 %1063  ;;  %688 = vrot.lane.b32.xlu2 %v605_v42, %s2558_s24  ;;  %v1350_v61 = vld [vmem:[#allocation2 + $0x99] sm:$0xff] }
 0x2da   :  { %v2297_v55 = vpop.f32.mrf.mxu2  ;;  %1077 = vrot.lane.b32.xlu1 %v995_v39, %s2561_s3  ;;  %v1138_v35 = vadd.f32 %v1064_v50, %v957_v36  ;;  %v3623_v36 = vld [vmem:[%s4117_s7 + $0xc8] sm:$0xff]  ;;  %v1380_v50 = vmul.f32 %v1350_v61, %v3433_v49 }
 0x2db   :  { %v2298_v34 = vadd.f32 %v3345_v60, %v2297_v55  ;;  %v2051_v45 = vpop.permute.xlu2 %2050  ;;  %v607_v44 = vmul.f32 %v3623_v36, %v577_v51 }
 0x2dc   :  { %v675_v21 = vpop.permute.xlu1 %674  ;;  %v3616_v37 = vadd.f32 %v1244_v27, %v1138_v35  ;;  %v815_v27 = vmul.f32 %v785_v26, %v3602_v31  ;;  %v449_v35 = vld [vmem:[#allocation2 + $0x8d] sm:$0xff]  ;;  %v817_v26 = vmul.f32 %v3623_v36, %v787_v18 }
 0x2dd   :  { %v2365_v33 = vadd.f32 %v2525_v7, %v2298_v34  ;;  %v748_v9 = vadd.f32 %v675_v21, %v508_v10  ;;  %v1706_v34 = vadd.f32 %v3576_v17, %v1525_v20  ;;  %v509_v10 = vmul.f32 %v3433_v49, %v449_v35  ;;  %v1176_v21 = vld [vmem:[#allocation2 + $0xc8] sm:$0xff]  ;;  %v1740_v17 = vld [vmem:[#allocation2 + $0x9a] sm:$0xff] }
 0x2df   :  { %v2395_v28 = vmax.f32 %v2365_v33, 0.0  ;;  %2052 = vrot.lane.b32.xlu0 %v1978_v1, %s2565_s1  ;;  %v1916_v63 = vadd.f32 %v1839_v15, %v1706_v34  ;;  %v1770_v1 = vmul.f32 %v1740_v17, %v3331_v25 }
 0x2e1   :  { %2425 = vst.msk [vmem:[%s4121_s8 + $0x28] sm:$0xff] %vm87_vm0, %v2395_v28  ;;  %v1841_v5 = vpop.permute.xlu0 %1840  ;;  %898 = vrot.lane.b32.xlu2 %v815_v27, %s2559_s25  ;;  %v450_v28 = vld [vmem:[#allocation2 + $0x95] sm:$0xff] }
 0x2e2   :  { %692 = vrot.lane.b32.xlu1 %v607_v44, %s2558_s24  ;;  %v510_v20 = vmul.f32 %v3408_v19, %v450_v28 }
 0x2e3   :  { %v677_v55 = vpop.permute.xlu2 %676 }
 0x2e4   :  { %v885_v39 = vpop.permute.xlu1 %884  ;;  %v749_v7 = vadd.f32 %v677_v55, %v509_v10  ;;  %v1951_v55 = vld [vmem:[#allocation2 + $0xa3] sm:$0xff] }
 0x2e5   :  { %v958_v42 = vadd.f32 %v885_v39, %v748_v9  ;;  %v2126_v9 = vadd.f32 %v2049_v14, %v1916_v63  ;;  %v996_v14 = vmul.f32 %v3580_v57, %v3602_v31  ;;  %v1560_v57 = vmul.f32 %v1350_v61, %v3331_v25  ;;  %v1351_v61 = vld [vmem:[#allocation2 + $0xa1] sm:$0xff] }
 0x2e6   :  { %v1561_v28 = vmul.f32 %v1351_v61, %v3433_v49 }
 0x2e7   :  { %1457 = vrot.lane.b32.xlu0 %v1380_v50, %s2562_s11 }
 0x2e9   :  { %v1452_v53 = vpop.permute.xlu0 %1451  ;;  %1259 = vrot.lane.b32.xlu2 %v1176_v21, %s2560_s28 }
 0x2ea   :  { %902 = vrot.lane.b32.xlu1 %v817_v26, %s2559_s25  ;;  %v1527_v41 = vadd.f32 %v1452_v53, %v3573_v46  ;;  %v2160_v46 = vadd.f32 %v3568_v29, %v2126_v9  ;;  %v1352_v53 = vld [vmem:[#allocation2 + $0xa9] sm:$0xff] }
 0x2eb   :  { %v887_v51 = vpop.permute.xlu2 %886  ;;  %v1382_v9 = vmul.f32 %v1352_v53, %v3473_v2 }
 0x2ec   :  { %v1631_v33 = vpop.permute.xlu1 %1630  ;;  %v959_v15 = vadd.f32 %v887_v51, %v749_v7  ;;  %v2190_v34 = vmax.f32 %v2160_v46, 0.0 }
 0x2ed   :  { %v1707_v18 = vadd.f32 %v1631_v33, %v1526_v32  ;;  %v1741_v33 = vld [vmem:[#allocation2 + $0xa2] sm:$0xff] }
 0x2ef   :  { %v1917_v44 = vadd.f32 %v1841_v5, %v1707_v18  ;;  %1846 = vrot.lane.b32.xlu0 %v1770_v1, %s2564_s13  ;;  %v2527_v18 = vld [vmem:[%s4114_s0 + $0x30] sm:$0xff] }
 0x2f1   :  { %v2127_v27 = vadd.f32 %v2051_v45, %v1917_v44  ;;  %v679_v39 = vpop.permute.xlu0 %678  ;;  %1079 = vrot.lane.b32.xlu2 %v996_v14, %s2561_s3  ;;  %v1981_v45 = vmul.f32 %v1951_v55, %v3433_v49 }
 0x2f2   :  { %2054 = vrot.lane.b32.xlu1 %v1979_v62, %s2565_s1  ;;  %v750_v0 = vadd.f32 %v679_v39, %v510_v20  ;;  %v1950_v39 = vld [vmem:[#allocation2 + $0x9b] sm:$0xff] }
 0x2f3   :  { %v2161_v5 = vadd.f32 %v3568_v29, %v2127_v27  ;;  %v1633_v11 = vpop.permute.xlu2 %1632 }
 0x2f4   :  { %v1246_v50 = vpop.permute.xlu1 %1245  ;;  %v1708_v26 = vadd.f32 %v1633_v11, %v1527_v41  ;;  %v1980_v11 = vmul.f32 %v1950_v39, %v3331_v25  ;;  %v1953_v39 = vld [vmem:[#allocation2 + $0xb3] sm:$0xff] }
 0x2f5   :  { %v2191_v35 = vmax.f32 %v2161_v5, 0.0 }
 0x2f7   :  { %v2214_v16 = vpack.c.bf16 %v2191_v35, %v2190_v34  ;;  %2058 = vrot.lane.b32.xlu0 %v1981_v45, %s2565_s1  ;;  %v1178_v35 = vld [vmem:[#allocation2 + $0xd8] sm:$0xff] }
 0x2f9   :  { %2494 = vmatmul.msk.bf16.gmra.mxu2 %vm263_vm2, %v2214_v16  ;;  %v889_v63 = vpop.permute.xlu0 %888  ;;  %1455 = vrot.lane.b32.xlu2 %v3336_v23, %s2562_s11  ;;  %v1771_v23 = vmul.f32 %v1741_v33, %v3433_v49  ;;  %v1562_v49 = vmul.f32 %v1352_v53, %v3408_v19 }
 0x2fa   :  { %1636 = vrot.lane.b32.xlu1 %v1560_v57, %s2563_s12  ;;  %v960_v10 = vadd.f32 %v889_v63, %v750_v0  ;;  %v2528_v0 = vld [vmem:[%s4114_s0 + $0x38] sm:$0xff] }
 0x2fb   :  { %v1248_v7 = vpop.permute.xlu2 %1247  ;;  %v3699_v63 = vld [vmem:[#allocation2 + $0xd1] sm:$0xff] }
 0x2fc   :  { %v2300_v21 = vpop.f32.mrf.mxu2  ;;  %v1066_v32 = vpop.permute.xlu1 %1065 }
 0x2fd   :  { %v2301_v41 = vadd.f32 %v3345_v60, %v2300_v21  ;;  %v1139_v17 = vadd.f32 %v1066_v32, %v958_v42  ;;  %v1387_v21 = vmul.f32 %v3699_v63, %v3562_v54  ;;  %v451_v32 = vld [vmem:[#allocation2 + $0x9d] sm:$0xff] }
 0x2fe   :  { %v511_v33 = vmul.f32 %v3473_v2, %v451_v32  ;;  %v2529_v32 = vld [vmem:[%s4114_s0 + $0x40] sm:$0xff] }
 0x2ff   :  { %v2366_v51 = vadd.f32 %v2527_v18, %v2301_v41  ;;  %v3668_v48 = vadd.f32 %v1246_v50, %v1139_v17  ;;  %1461 = vrot.lane.b32.xlu0 %v1382_v9, %s2562_s11  ;;  %v1381_v41 = vmul.f32 %v1351_v61, %v3408_v19  ;;  %v452_v17 = vld [vmem:[#allocation2 + $0xa5] sm:$0xff]  ;;  %v1748_v9 = vld [vmem:[#allocation2 + $0xda] sm:$0xff] }
 0x301   :  { %v2396_v1 = vmax.f32 %v2366_v51, 0.0  ;;  %v1635_v42 = vpop.permute.xlu0 %1634  ;;  %1638 = vrot.lane.b32.xlu2 %v1561_v28, %s2563_s12  ;;  %v512_v51 = vmul.f32 %v3530_v8, %v452_v17  ;;  %v3713_v28 = vld [vmem:[#allocation2 + $0xb1] sm:$0xff] }
 0x302   :  { %1848 = vrot.lane.b32.xlu1 %v1771_v23, %s2564_s13 }
 0x303   :  { %2426 = vst.msk [vmem:[%s4121_s8 + $0x30] sm:$0xff] %vm87_vm0, %v2396_v1  ;;  %v1068_v20 = vpop.permute.xlu2 %1067 }
 0x304   :  { %v2302_v44 = vpop.f32.mrf.mxu2  ;;  %v1454_v62 = vpop.permute.xlu1 %1453  ;;  %v1140_v14 = vadd.f32 %v1068_v20, %v959_v15  ;;  %v3695_v15 = vld [vmem:[#allocation2 + $0xe1] sm:$0xff] }
 0x305   :  { %v2303_v46 = vadd.f32 %v3345_v60, %v2302_v44  ;;  %v1528_v27 = vadd.f32 %v1454_v62, %v3616_v37  ;;  %v1569_v53 = vmul.f32 %v3623_v36, %v3695_v15  ;;  %v1778_v44 = vmul.f32 %v1748_v9, %v3562_v54  ;;  %v453_v62 = vld [vmem:[#allocation2 + $0xad] sm:$0xff]  ;;  %v1749_v9 = vld [vmem:[#allocation2 + $0xe2] sm:$0xff] }
 0x306   :  { %v3686_v50 = vadd.f32 %v1248_v7, %v1140_v14 }
 0x307   :  { %v2367_v55 = vadd.f32 %v2528_v0, %v2303_v46  ;;  %v1709_v5 = vadd.f32 %v1635_v42, %v1528_v27  ;;  %1640 = vrot.lane.b32.xlu0 %v1562_v49, %s2563_s12  ;;  %v1358_v46 = vld [vmem:[#allocation2 + $0xd9] sm:$0xff]  ;;  %v513_v27 = vmul.f32 %v3493_v12, %v453_v62 }
 0x308   :  { %v1388_v20 = vmul.f32 %v3623_v36, %v1358_v46 }
 0x309   :  { %v2397_v34 = vmax.f32 %v2367_v55, 0.0  ;;  %v1250_v37 = vpop.permute.xlu0 %1249  ;;  %2056 = vrot.lane.b32.xlu2 %v1980_v11, %s2565_s1 }
 0x30a   :  { %1263 = vrot.lane.b32.xlu1 %v1178_v35, %s2560_s28  ;;  %v1983_v35 = vmul.f32 %v1953_v39, %v3473_v2 }
 0x30b   :  { %2427 = vst.msk [vmem:[%s4121_s8 + $0x38] sm:$0xff] %vm87_vm0, %v2397_v34  ;;  %v1845_v57 = vpop.permute.xlu2 %1844  ;;  %v1742_v34 = vld [vmem:[#allocation2 + $0xaa] sm:$0xff] }
 0x30c   :  { %v1843_v45 = vpop.permute.xlu1 %1842  ;;  %v3701_v25 = vadd.f32 %v1845_v57, %v1709_v5 }
 0x30d   :  { %v3697_v16 = vadd.f32 %v1843_v45, %v1708_v26  ;;  %v1772_v45 = vmul.f32 %v1742_v34, %v3408_v19 }
 0x30f   :  { %1654 = vrot.lane.b32.xlu0 %v1569_v53, %s2563_s12  ;;  %v1568_v53 = vmul.f32 %v1358_v46, %v3562_v54  ;;  %v2530_v46 = vld [vmem:[%s4114_s0 + $0x48] sm:$0xff] }
 0x311   :  { %v1070_v7 = vpop.permute.xlu0 %1069  ;;  %1459 = vrot.lane.b32.xlu2 %v1381_v41, %s2562_s11 }
 0x312   :  { %1471 = vrot.lane.b32.xlu1 %v1387_v21, %s2562_s11  ;;  %v1141_v26 = vadd.f32 %v1070_v7, %v960_v10  ;;  %v1563_v10 = vmul.f32 %v3713_v28, %v3473_v2 }
 0x313   :  { %v683_v1 = vpop.permute.xlu2 %682 }
 0x314   :  { %v681_v18 = vpop.permute.xlu1 %680  ;;  %v3715_v42 = vadd.f32 %v1250_v37, %v1141_v26  ;;  %v752_v61 = vadd.f32 %v683_v1, %v512_v51  ;;  %v1179_v51 = vld [vmem:[#allocation2 + $0xe0] sm:$0xff]  ;;  %v1779_v1 = vmul.f32 %v3623_v36, %v1749_v9  ;;  %v1180_v9 = vld [vmem:[#allocation2 + $0xe8] sm:$0xff] }
 0x315   :  { %v751_v23 = vadd.f32 %v681_v18, %v511_v33  ;;  %v1743_v18 = vld [vmem:[#allocation2 + $0xb2] sm:$0xff] }
 0x317   :  { %1862 = vrot.lane.b32.xlu0 %v1778_v44, %s2564_s13  ;;  %v1773_v44 = vmul.f32 %v1743_v18, %v3473_v2  ;;  %v1952_v2 = vld [vmem:[#allocation2 + $0xab] sm:$0xff] }
 0x319   :  { %v685_v14 = vpop.permute.xlu0 %684  ;;  %1473 = vrot.lane.b32.xlu2 %v1388_v20, %s2562_s11 }
 0x31a   :  { %1642 = vrot.lane.b32.xlu1 %v1563_v10, %s2563_s12  ;;  %v753_v49 = vadd.f32 %v685_v14, %v513_v27  ;;  %v1354_v27 = vld [vmem:[#allocation2 + $0xb9] sm:$0xff] }
 0x31b   :  { %v893_v5 = vpop.permute.xlu2 %892 }
 0x31c   :  { %v891_v0 = vpop.permute.xlu1 %890  ;;  %v962_v11 = vadd.f32 %v893_v5, %v752_v61 }
 0x31d   :  { %v961_v55 = vadd.f32 %v891_v0, %v751_v23  ;;  %v1958_v0 = vld [vmem:[#allocation2 + $0xdb] sm:$0xff] }
 0x31f   :  { %2062 = vrot.lane.b32.xlu0 %v1983_v35, %s2565_s1  ;;  %v1988_v35 = vmul.f32 %v1958_v0, %v3562_v54 }
 0x320   :  { %v2305_v37 = vpop.f32.mrf.mxu2 }
 0x321   :  { %v2306_v57 = vadd.f32 %v3345_v60, %v2305_v37  ;;  %v895_v21 = vpop.permute.xlu0 %894  ;;  %1652 = vrot.lane.b32.xlu2 %v1568_v53, %s2563_s12 }
 0x322   :  { %1850 = vrot.lane.b32.xlu1 %v1772_v45, %s2564_s13  ;;  %v963_v17 = vadd.f32 %v895_v21, %v753_v49 }
 0x323   :  { %v2368_v41 = vadd.f32 %v2529_v32, %v2306_v57  ;;  %v1254_v33 = vpop.permute.xlu2 %1253  ;;  %v454_v32 = vld [vmem:[#allocation2 + $0xb5] sm:$0xff] }
 0x324   :  { %v1252_v7 = vpop.permute.xlu1 %1251 }
 0x325   :  { %v2398_v26 = vmax.f32 %v2368_v41, 0.0  ;;  %v1564_v41 = vmul.f32 %v1354_v27, %v3530_v8 }
 0x327   :  { %2428 = vst.msk [vmem:[%s4121_s8 + $0x40] sm:$0xff] %vm87_vm0, %v2398_v26  ;;  %1265 = vrot.lane.b32.xlu0 %v1179_v51, %s2560_s28  ;;  %v455_v26 = vld [vmem:[#allocation2 + $0xbd] sm:$0xff] }
 0x328   :  { %v2307_v23 = vpop.f32.mrf.mxu2 }
 0x329   :  { %v2308_v61 = vadd.f32 %v3345_v60, %v2307_v23  ;;  %v1256_v62 = vpop.permute.xlu0 %1255  ;;  %1852 = vrot.lane.b32.xlu2 %v1773_v44, %s2564_s13  ;;  %v1384_v60 = vmul.f32 %v1354_v27, %v3493_v12  ;;  %v3771_v23 = vld [vmem:[#allocation2 + $0xf1] sm:$0xff] }
 0x32a   :  { %1864 = vrot.lane.b32.xlu1 %v1779_v1, %s2564_s13  ;;  %v3776_v27 = vld [vmem:[%s4117_s7 + $0xd8] sm:$0xff] }
 0x32b   :  { %v2369_v10 = vadd.f32 %v2530_v46, %v2308_v61  ;;  %v1074_v39 = vpop.permute.xlu2 %1073  ;;  %v456_v61 = vld [vmem:[#allocation2 + $0xc5] sm:$0xff] }
 0x32c   :  { %v1072_v20 = vpop.permute.xlu1 %1071  ;;  %v1143_v5 = vadd.f32 %v1074_v39, %v962_v11 }
 0x32d   :  { %v2399_v14 = vmax.f32 %v2369_v10, 0.0  ;;  %v1142_v49 = vadd.f32 %v1072_v20, %v961_v55  ;;  %v1982_v55 = vmul.f32 %v1952_v2, %v3408_v19  ;;  %v1571_v20 = vmul.f32 %v3776_v27, %v3771_v23  ;;  %v1750_v2 = vld [vmem:[#allocation2 + $0xea] sm:$0xff] }
 0x32e   :  { %v3757_v37 = vadd.f32 %v1254_v33, %v1143_v5  ;;  %v514_v33 = vmul.f32 %v3550_v13, %v454_v32  ;;  %v1383_v5 = vmul.f32 %v3713_v28, %v3530_v8 }
 0x32f   :  { %2429 = vst.msk [vmem:[%s4121_s8 + $0x48] sm:$0xff] %vm87_vm0, %v2399_v14  ;;  %v3753_v34 = vadd.f32 %v1252_v7, %v1142_v49  ;;  %1465 = vrot.lane.b32.xlu0 %v1384_v60, %s2562_s11  ;;  %v1959_v7 = vld [vmem:[#allocation2 + $0xe3] sm:$0xff]  ;;  %v516_v14 = vmul.f32 %v3562_v54, %v456_v61  ;;  %v3785_v49 = vld [vmem:[%s4117_s7 + $0xd0] sm:$0xff] }
 0x330   :  { %v1989_v19 = vmul.f32 %v3623_v36, %v1959_v7  ;;  %v1389_v39 = vmul.f32 %v3785_v49, %v3695_v15 }
 0x331   :  { %v1076_v45 = vpop.permute.xlu0 %1075  ;;  %2060 = vrot.lane.b32.xlu2 %v1982_v55, %s2565_s1 }
 0x332   :  { %2072 = vrot.lane.b32.xlu1 %v1988_v35, %s2565_s1  ;;  %v1144_v11 = vadd.f32 %v1076_v45, %v963_v17  ;;  %v515_v17 = vmul.f32 %v3602_v31, %v455_v26  ;;  %v3793_v45 = vld [vmem:[#allocation2 + $0xc1] sm:$0xff] }
 0x333   :  { %v689_v53 = vpop.permute.xlu2 %688  ;;  %v1565_v15 = vmul.f32 %v3793_v45, %v3493_v12 }
 0x334   :  { %v687_v57 = vpop.permute.xlu1 %686  ;;  %v3762_v21 = vadd.f32 %v1256_v62, %v1144_v11  ;;  %v755_v1 = vadd.f32 %v689_v53, %v515_v17  ;;  %v1780_v11 = vmul.f32 %v3785_v49, %v1750_v2  ;;  %v1181_v2 = vld [vmem:[#allocation2 + $0xf0] sm:$0xff] }
 0x335   :  { %v754_v51 = vadd.f32 %v687_v57, %v514_v33  ;;  %v1360_v57 = vld [vmem:[#allocation2 + $0xe9] sm:$0xff] }
 0x336   :  { %v1390_v28 = vmul.f32 %v3776_v27, %v1360_v57  ;;  %v1570_v61 = vmul.f32 %v3785_v49, %v1360_v57 }
 0x337   :  { %1644 = vrot.lane.b32.xlu0 %v1564_v41, %s2563_s12  ;;  %v1955_v41 = vld [vmem:[#allocation2 + $0xc3] sm:$0xff] }
 0x338   :  { %v1985_v17 = vmul.f32 %v1955_v41, %v3493_v12  ;;  %v2535_v41 = vld [vmem:[%s4114_s0 + $0x58] sm:$0xff] }
 0x339   :  { %v691_v18 = vpop.permute.xlu0 %690  ;;  %2074 = vrot.lane.b32.xlu2 %v1989_v19, %s2565_s1  ;;  %v1744_v19 = vld [vmem:[#allocation2 + $0xba] sm:$0xff] }
 0x33a   :  { %1267 = vrot.lane.b32.xlu1 %v1180_v9, %s2560_s28  ;;  %v756_v0 = vadd.f32 %v691_v18, %v516_v14  ;;  %v2534_v14 = vld [vmem:[%s4114_s0 + $0x50] sm:$0xff] }
 0x33b   :  { %v899_v46 = vpop.permute.xlu2 %898 }
 0x33c   :  { %v897_v44 = vpop.permute.xlu1 %896  ;;  %v965_v10 = vadd.f32 %v899_v46, %v755_v1 }
 0x33d   :  { %v964_v62 = vadd.f32 %v897_v44, %v754_v51  ;;  %v1774_v51 = vmul.f32 %v1744_v19, %v3530_v8  ;;  %v1954_v19 = vld [vmem:[#allocation2 + $0xbb] sm:$0xff] }
 0x33f   :  { %1658 = vrot.lane.b32.xlu0 %v1571_v20, %s2563_s12 }
 0x341   :  { %v901_v60 = vpop.permute.xlu0 %900  ;;  %1463 = vrot.lane.b32.xlu2 %v1383_v5, %s2562_s11  ;;  %v1751_v5 = vld [vmem:[#allocation2 + $0xf2] sm:$0xff] }
 0x342   :  { %1475 = vrot.lane.b32.xlu1 %v1389_v39, %s2562_s11  ;;  %v966_v54 = vadd.f32 %v901_v60, %v756_v0  ;;  %v1745_v60 = vld [vmem:[#allocation2 + $0xc2] sm:$0xff] }
 0x343   :  { %v1260_v55 = vpop.permute.xlu2 %1259 }
 0x344   :  { %v1258_v35 = vpop.permute.xlu1 %1257 }
 0x347   :  { %1866 = vrot.lane.b32.xlu0 %v1780_v11, %s2564_s13 }
 0x349   :  { %v1082_v53 = vpop.permute.xlu0 %1081  ;;  %1477 = vrot.lane.b32.xlu2 %v1390_v28, %s2562_s11  ;;  %v1356_v28 = vld [vmem:[#allocation2 + $0xc9] sm:$0xff] }
 0x34a   :  { %1646 = vrot.lane.b32.xlu1 %v1565_v15, %s2563_s12  ;;  %v3802_v32 = vadd.f32 %v1082_v53, %v966_v54 }
 0x34b   :  { %v1080_v33 = vpop.permute.xlu2 %1079 }
 0x34c   :  { %v1078_v7 = vpop.permute.xlu1 %1077  ;;  %v1146_v9 = vadd.f32 %v1080_v33, %v965_v10  ;;  %v1960_v33 = vld [vmem:[#allocation2 + $0xeb] sm:$0xff] }
 0x34d   :  { %v1145_v26 = vadd.f32 %v1078_v7, %v964_v62  ;;  %v3816_v62 = vld [vmem:[%s4120_s6] ss:$0 sm:$0xff] }
 0x34e   :  { %v3809_v1 = vadd.f32 %v1260_v55, %v1146_v9  ;;  %v1775_v55 = vmul.f32 %v1745_v60, %v3493_v12  ;;  %v1386_v12 = vmul.f32 %v1356_v28, %v3602_v31 }
 0x34f   :  { %v3805_v18 = vadd.f32 %v1258_v35, %v1145_v26  ;;  %2066 = vrot.lane.b32.xlu0 %v1985_v17, %s2565_s1  ;;  %v1781_v35 = vmul.f32 %v3776_v27, %v1751_v5  ;;  %v1990_v17 = vmul.f32 %v3785_v49, %v1960_v33 }
 0x351   :  { %v2053_v46 = vpop.permute.xlu0 %2052  ;;  %1656 = vrot.lane.b32.xlu2 %v1570_v61, %s2563_s12  ;;  %v1984_v61 = vmul.f32 %v1954_v19, %v3530_v8 }
 0x352   :  { %v2310_v44 = vpop.f32.mrf.mxu2  ;;  %1854 = vrot.lane.b32.xlu1 %v1774_v51, %s2564_s13  ;;  %v2128_v51 = vadd.f32 %v2053_v46, %v3697_v16  ;;  %v1566_v16 = vmul.f32 %v1356_v28, %v3550_v13  ;;  %v1961_v46 = vld [vmem:[#allocation2 + $0xf3] sm:$0xff] }
 0x353   :  { %v2311_v10 = vadd.f32 %v3816_v62, %v2310_v44  ;;  %v1456_v0 = vpop.permute.xlu2 %1455 }
 0x354   :  { %v3820_v20 = vpop.permute.xlu1 %692 }
 0x355   :  { %v2370_v39 = vadd.f32 %v2534_v14, %v2311_v10  ;;  %v2162_v14 = vadd.f32 %v3568_v29, %v2128_v51 }
 0x357   :  { %v2400_v54 = vmax.f32 %v2370_v39, 0.0  ;;  %1269 = vrot.lane.b32.xlu0 %v1181_v2, %s2560_s28  ;;  %v1991_v2 = vmul.f32 %v3776_v27, %v1961_v46 }
 0x359   :  { %2430 = vst.msk [vmem:[%s4121_s8 + $0x50] sm:$0xff] %vm87_vm0, %v2400_v54  ;;  %v1458_v57 = vpop.permute.xlu0 %1457  ;;  %1856 = vrot.lane.b32.xlu2 %v1775_v55, %s2564_s13  ;;  %v2192_v54 = vmax.f32 %v2162_v14, 0.0  ;;  %v1543_v55 = vld [vmem:[#allocation2 + $0x101] sm:$0xff] }
 0x35a   :  { %v2312_v11 = vpop.f32.mrf.mxu2  ;;  %1868 = vrot.lane.b32.xlu1 %v1781_v35, %s2564_s13  ;;  %v1182_v35 = vld [vmem:[#allocation2 + $0xf8] sm:$0xff]  ;;  %v1530_v19 = vadd.f32 %v1458_v57, %v3686_v50 }
 0x35b   :  { %v2313_v15 = vadd.f32 %v3816_v62, %v2312_v11  ;;  %v1639_v26 = vpop.permute.xlu2 %1638  ;;  %v1752_v50 = vld [vmem:[#allocation2 + $0xfa] sm:$0xff] }
 0x35c   :  { %v3835_v53 = vpop.permute.xlu1 %902 }
 0x35d   :  { %v2371_v7 = vadd.f32 %v2535_v41, %v2313_v15  ;;  %v1529_v15 = vadd.f32 %v1456_v0, %v3668_v48  ;;  %v3863_v41 = vld [vmem:[%s4117_s7 + $0xe8] sm:$0xff]  ;;  %v3874_v48 = vld [vmem:[%s4117_s7 + $0xe0] sm:$0xff] }
 0x35e   :  { %v1391_v0 = vmul.f32 %v3874_v48, %v3771_v23 }
 0x35f   :  { %v2401_v9 = vmax.f32 %v2371_v7, 0.0  ;;  %1469 = vrot.lane.b32.xlu0 %v1386_v12, %s2562_s11  ;;  %v1573_v7 = vmul.f32 %v3863_v41, %v1543_v55 }
 0x361   :  { %2431 = vst.msk [vmem:[%s4121_s8 + $0x58] sm:$0xff] %vm87_vm0, %v2401_v9  ;;  %v1847_v44 = vpop.permute.xlu0 %1846  ;;  %2064 = vrot.lane.b32.xlu2 %v1984_v61, %s2565_s1  ;;  %v1711_v61 = vadd.f32 %v1639_v26, %v1530_v19 }
 0x362   :  { %2076 = vrot.lane.b32.xlu1 %v1990_v17, %s2565_s1  ;;  %v1385_v17 = vmul.f32 %v3793_v45, %v3550_v13  ;;  %v1567_v45 = vmul.f32 %v3699_v63, %v3602_v31  ;;  %v1746_v63 = vld [vmem:[#allocation2 + $0xca] sm:$0xff] }
 0x363   :  { %v2057_v39 = vpop.permute.xlu2 %2056  ;;  %v1776_v19 = vmul.f32 %v1746_v63, %v3550_v13 }
 0x364   :  { %v2055_v10 = vpop.permute.xlu1 %2054 }
 0x365   :  { %v2129_v5 = vadd.f32 %v2055_v10, %v3701_v25 }
 0x367   :  { %v2163_v60 = vadd.f32 %v3568_v29, %v2129_v5  ;;  %1648 = vrot.lane.b32.xlu0 %v1566_v16, %s2563_s12  ;;  %v1782_v5 = vmul.f32 %v3874_v48, %v1752_v50  ;;  %v1362_v16 = vld [vmem:[#allocation2 + $0xf9] sm:$0xff] }
 0x369   :  { %v2193_v8 = vmax.f32 %v2163_v60, 0.0  ;;  %v2059_v11 = vpop.permute.xlu0 %2058  ;;  %2078 = vrot.lane.b32.xlu2 %v1991_v2, %s2565_s1  ;;  %v1957_v2 = vld [vmem:[#allocation2 + $0xd3] sm:$0xff] }
 0x36a   :  { %1271 = vrot.lane.b32.xlu1 %v1182_v35, %s2560_s28 }
 0x36b   :  { %v2215_v25 = vpack.c.bf16 %v2193_v8, %v2192_v54  ;;  %v3866_v33 = vpop.permute.xlu2 %1459 }
 0x36c   :  { %v1637_v28 = vpop.permute.xlu1 %1636 }
 0x36d   :  { %v1710_v12 = vadd.f32 %v1637_v28, %v1529_v15  ;;  %2495 = vmatmul.msk.bf16.gmra.mxu2 %vm263_vm2, %v2215_v25  ;;  %v1987_v28 = vmul.f32 %v1957_v2, %v3602_v31 }
 0x36f   :  { %v1920_v9 = vadd.f32 %v1847_v44, %v1710_v12  ;;  %1662 = vrot.lane.b32.xlu0 %v1573_v7, %s2563_s12  ;;  %v2538_v7 = vld [vmem:[%s4114_s0 + $0x60] sm:$0xff] }
 0x371   :  { %v1462_v51 = vpop.permute.xlu0 %1461  ;;  %v2130_v10 = vadd.f32 %v2057_v39, %v1920_v9  ;;  %1467 = vrot.lane.b32.xlu2 %v1385_v17, %s2562_s11  ;;  %v1392_v39 = vmul.f32 %v3863_v41, %v1362_v16 }
 0x372   :  { %1479 = vrot.lane.b32.xlu1 %v1391_v0, %s2562_s11  ;;  %v1572_v0 = vmul.f32 %v3874_v48, %v1362_v16  ;;  %v2539_v16 = vld [vmem:[%s4114_s0 + $0x68] sm:$0xff]  ;;  %v1532_v2 = vadd.f32 %v1462_v51, %v3753_v34  ;;  %v1531_v34 = vadd.f32 %v3866_v33, %v3715_v42 }
 0x373   :  { %v3882_v44 = vpop.permute.xlu2 %1473  ;;  %v2164_v23 = vadd.f32 %v3568_v29, %v2130_v10 }
 0x374   :  { %v1849_v57 = vpop.permute.xlu1 %1848 }
 0x375   :  { %v1921_v14 = vadd.f32 %v1849_v57, %v1711_v61  ;;  %v2194_v8 = vmax.f32 %v2164_v23, 0.0  ;;  %v1753_v61 = vld [vmem:[#allocation2 + $0x102] sm:$0xff] }
 0x377   :  { %v2131_v46 = vadd.f32 %v2059_v11, %v1921_v14  ;;  %1870 = vrot.lane.b32.xlu0 %v1782_v5, %s2564_s13  ;;  %v1747_v5 = vld [vmem:[#allocation2 + $0xd2] sm:$0xff] }
 0x379   :  { %v2165_v26 = vadd.f32 %v3568_v29, %v2131_v46  ;;  %v1641_v60 = vpop.permute.xlu0 %1640  ;;  %1481 = vrot.lane.b32.xlu2 %v1392_v39, %s2562_s11  ;;  %v1783_v46 = vmul.f32 %v3863_v41, %v1753_v61  ;;  %v1777_v39 = vmul.f32 %v1747_v5, %v3602_v31  ;;  %v1962_v31 = vld [vmem:[#allocation2 + $0xfb] sm:$0xff] }
 0x37a   :  { %1650 = vrot.lane.b32.xlu1 %v1567_v45, %s2563_s12  ;;  %v457_v45 = vld [vmem:[#allocation2 + $0xcd] sm:$0xff] }
 0x37b   :  { %v2195_v54 = vmax.f32 %v2165_v26, 0.0  ;;  %v3894_v15 = vpop.permute.xlu2 %1652 }
 0x37c   :  { %v2315_v35 = vpop.f32.mrf.mxu2  ;;  %v1264_v55 = vpop.permute.xlu1 %1263 }
 0x37d   :  { %v2316_v11 = vadd.f32 %v3816_v62, %v2315_v35  ;;  %v2216_v25 = vpack.c.bf16 %v2195_v54, %v2194_v8  ;;  %v517_v8 = vmul.f32 %v3623_v36, %v457_v45  ;;  %v1992_v36 = vmul.f32 %v3874_v48, %v1962_v31 }
 0x37f   :  { %v2372_v12 = vadd.f32 %v2538_v7, %v2316_v11  ;;  %2496 = vmatmul.msk.bf16.gmra.mxu2 %vm263_vm2, %v2216_v25  ;;  %2070 = vrot.lane.b32.xlu0 %v1987_v28, %s2565_s1  ;;  %v757_v11 = vadd.f32 %v3820_v20, %v517_v8  ;;  %v1956_v28 = vld [vmem:[#allocation2 + $0xcb] sm:$0xff] }
 0x380   :  { %v1986_v51 = vmul.f32 %v1956_v28, %v3550_v13 }
 0x381   :  { %v2402_v9 = vmax.f32 %v2372_v12, 0.0  ;;  %v1655_v17 = vpop.permute.xlu0 %1654  ;;  %1660 = vrot.lane.b32.xlu2 %v1572_v0, %s2563_s12  ;;  %v967_v7 = vadd.f32 %v3835_v53, %v757_v11 }
 0x382   :  { %1858 = vrot.lane.b32.xlu1 %v1776_v19, %s2564_s13 }
 0x383   :  { %2432 = vst.msk [vmem:[%s4121_s8 + $0x60] sm:$0xff] %vm87_vm0, %v2402_v9  ;;  %v1853_v14 = vpop.permute.xlu2 %1852  ;;  %v1712_v9 = vadd.f32 %v1641_v60, %v1531_v34  ;;  %v1148_v20 = vadd.f32 %v3035_v58, %v967_v7  ;;  %v1327_v58 = vadd.f32 %v2965_v47, %v3802_v32 }
 0x384   :  { %v2317_v10 = vpop.f32.mrf.mxu2  ;;  %v1472_v50 = vpop.permute.xlu1 %1471 }
 0x385   :  { %v2318_v57 = vadd.f32 %v3816_v62, %v2317_v10  ;;  %v1963_v10 = vld [vmem:[#allocation2 + $0x103] sm:$0xff]  ;;  %v1328_v53 = vadd.f32 %v1264_v55, %v1148_v20 }
 0x386   :  { %v1993_v13 = vmul.f32 %v3863_v41, %v1963_v10 }
 0x387   :  { %v2373_v23 = vadd.f32 %v2539_v16, %v2318_v57  ;;  %v1538_v33 = vadd.f32 %v3882_v44, %v1328_v53 }
 0x389   :  { %v2403_v26 = vmax.f32 %v2373_v23, 0.0  ;;  %v1863_v54 = vpop.permute.xlu0 %1862  ;;  %1860 = vrot.lane.b32.xlu2 %v1777_v39, %s2564_s13  ;;  %v1719_v16 = vadd.f32 %v1655_v17, %v1538_v33 }
 0x38a   :  { %1872 = vrot.lane.b32.xlu1 %v1783_v46, %s2564_s13 }
 0x38b   :  { %2433 = vst.msk [vmem:[%s4121_s8 + $0x68] sm:$0xff] %vm87_vm0, %v2403_v26  ;;  %v2061_v25 = vpop.permute.xlu2 %2060  ;;  %v1537_v26 = vadd.f32 %v1472_v50, %v1327_v58 }
 0x38c   :  { %v1643_v35 = vpop.permute.xlu1 %1642 }
 0x38d   :  { %v1713_v63 = vadd.f32 %v1643_v35, %v1532_v2  ;;  %v1718_v44 = vadd.f32 %v3894_v15, %v1537_v26 }
 0x38f   :  { %v1923_v12 = vadd.f32 %v1853_v14, %v1713_v63 }
 0x391   :  { %v2063_v19 = vpop.permute.xlu0 %2062  ;;  %2068 = vrot.lane.b32.xlu2 %v1986_v51, %s2565_s1 }
 0x392   :  { %2080 = vrot.lane.b32.xlu1 %v1992_v36, %s2565_s1  ;;  %v2133_v0 = vadd.f32 %v2063_v19, %v1923_v12 }
 0x393   :  { %v2075_v57 = vpop.permute.xlu2 %2074 }
 0x394   :  { %v1851_v61 = vpop.permute.xlu1 %1850  ;;  %v2167_v46 = vadd.f32 %v3568_v29, %v2133_v0 }
 0x395   :  { %v1922_v5 = vadd.f32 %v1851_v61, %v1712_v9  ;;  %v459_v9 = vld [vmem:[#allocation2 + $0xdd] sm:$0xff] }
 0x396   :  { %v2197_v23 = vmax.f32 %v2167_v46, 0.0  ;;  %v519_v61 = vmul.f32 %v3776_v27, %v459_v9 }
 0x397   :  { %v2132_v42 = vadd.f32 %v2061_v25, %v1922_v5  ;;  %v1928_v25 = vadd.f32 %v1863_v54, %v1718_v44  ;;  %v458_v5 = vld [vmem:[#allocation2 + $0xd5] sm:$0xff] }
 0x399   :  { %v2166_v14 = vadd.f32 %v3568_v29, %v2132_v42  ;;  %v1266_v60 = vpop.permute.xlu0 %1265  ;;  %2082 = vrot.lane.b32.xlu2 %v1993_v13, %s2565_s1 }
 0x39b   :  { %v2196_v45 = vmax.f32 %v2166_v14, 0.0  ;;  %v1464_v39 = vpop.permute.xlu2 %1463  ;;  %v518_v14 = vmul.f32 %v3785_v49, %v458_v5 }
 0x39c   :  { %v1865_v55 = vpop.permute.xlu1 %1864  ;;  %v1533_v42 = vadd.f32 %v1464_v39, %v3757_v37 }
 0x39d   :  { %v1929_v8 = vadd.f32 %v1865_v55, %v1719_v16  ;;  %v2217_v2 = vpack.c.bf16 %v2197_v23, %v2196_v45  ;;  %v758_v27 = vadd.f32 %v2971_v52, %v518_v14 }
 0x39f   :  { %2497 = vmatmul.msk.bf16.gmra.mxu2 %vm263_vm2, %v2217_v2  ;;  %v2139_v35 = vadd.f32 %v2075_v57, %v1929_v8  ;;  %v759_v57 = vadd.f32 %v3087_v56, %v519_v61  ;;  %v968_v56 = vadd.f32 %v2991_v3, %v758_v27 }
 0x3a1   :  { %v1466_v11 = vpop.permute.xlu0 %1465  ;;  %v2173_v63 = vadd.f32 %v3568_v29, %v2139_v35  ;;  %v969_v46 = vadd.f32 %v3099_v6, %v759_v57  ;;  %v1149_v37 = vadd.f32 %v3039_v59, %v968_v56 }
 0x3a2   :  { %v1534_v20 = vadd.f32 %v1466_v11, %v3762_v21 }
 0x3a3   :  { %v1478_v47 = vpop.permute.xlu2 %1477  ;;  %v2203_v28 = vmax.f32 %v2173_v63, 0.0  ;;  %v1150_v16 = vadd.f32 %v3126_v38, %v969_v46  ;;  %v1329_v38 = vadd.f32 %v1266_v60, %v1149_v37 }
 0x3a4   :  { %v2073_v17 = vpop.permute.xlu1 %2072 }
 0x3a5   :  { %v2138_v32 = vadd.f32 %v2073_v17, %v1928_v25 }
 0x3a7   :  { %v2172_v31 = vadd.f32 %v3568_v29, %v2138_v32 }
 0x3a9   :  { %v2202_v7 = vmax.f32 %v2172_v31, 0.0  ;;  %v1645_v50 = vpop.permute.xlu0 %1644 }
 0x3aa   :  { %v1714_v58 = vadd.f32 %v1645_v50, %v1533_v42  ;;  %v460_v42 = vld [vmem:[#allocation2 + $0xe5] sm:$0xff] }
 0x3ab   :  { %v2220_v36 = vpack.c.bf16 %v2203_v28, %v2202_v7  ;;  %v1657_v51 = vpop.permute.xlu2 %1656 }
 0x3ac   :  { %v1268_v34 = vpop.permute.xlu1 %1267 }
 0x3ad   :  { %2500 = vmatmul.msk.bf16.vlgmr.msra.gmra.mxu3 %vm263_vm2, %v2220_v36  ;;  %v1330_v45 = vadd.f32 %v1268_v34, %v1150_v16 }
 0x3af   :  { %v1540_v39 = vadd.f32 %v1478_v47, %v1330_v45 }
 0x3b1   :  { %v1659_v12 = vpop.permute.xlu0 %1658 }
 0x3b2   :  { %v1721_v44 = vadd.f32 %v1659_v12, %v1540_v39 }
 0x3b3   :  { %v1857_v19 = vpop.permute.xlu2 %1856 }
 0x3b4   :  { %v1476_v15 = vpop.permute.xlu1 %1475 }
 0x3b5   :  { %v1539_v25 = vadd.f32 %v1476_v15, %v1329_v38 }
 0x3b7   :  { %v1720_v3 = vadd.f32 %v1657_v51, %v1539_v25  ;;  %v2542_v25 = vld [vmem:[%s4114_s0 + $0x78] sm:$0xff] }
 0x3b9   :  { %v1867_v54 = vpop.permute.xlu0 %1866 }
 0x3ba   :  { %v1930_v59 = vadd.f32 %v1867_v54, %v1720_v3 }
 0x3bb   :  { %v2065_v10 = vpop.permute.xlu2 %2064 }
 0x3bc   :  { %v1647_v0 = vpop.permute.xlu1 %1646 }
 0x3bd   :  { %v1715_v53 = vadd.f32 %v1647_v0, %v1534_v20  ;;  %v461_v0 = vld [vmem:[#allocation2 + $0xed] sm:$0xff] }
 0x3be   :  { %v521_v5 = vmul.f32 %v3863_v41, %v461_v0  ;;  %v2541_v41 = vld [vmem:[%s4114_s0 + $0x70] sm:$0xff] }
 0x3bf   :  { %v1925_v13 = vadd.f32 %v1857_v19, %v1715_v53 }
 0x3c1   :  { %v2067_v33 = vpop.permute.xlu0 %2066 }
 0x3c2   :  { %v2135_v21 = vadd.f32 %v2067_v33, %v1925_v13  ;;  %v761_v13 = vadd.f32 %v3167_v30, %v521_v5 }
 0x3c3   :  { %v2079_v55 = vpop.permute.xlu2 %2078 }
 0x3c4   :  { %v1855_v23 = vpop.permute.xlu1 %1854  ;;  %v2169_v6 = vadd.f32 %v3568_v29, %v2135_v21  ;;  %v971_v14 = vadd.f32 %v3182_v24, %v761_v13 }
 0x3c5   :  { %v1924_v26 = vadd.f32 %v1855_v23, %v1714_v58  ;;  %v520_v23 = vmul.f32 %v3874_v48, %v460_v42 }
 0x3c6   :  { %v2199_v35 = vmax.f32 %v2169_v6, 0.0 }
 0x3c7   :  { %v2134_v8 = vadd.f32 %v2065_v10, %v1924_v26  ;;  %v760_v26 = vadd.f32 %v3142_v4, %v520_v23 }
 0x3c9   :  { %v2168_v49 = vadd.f32 %v3568_v29, %v2134_v8  ;;  %v3957_v2 = vpop.permute.xlu0 %1269  ;;  %v3963_v29 = vld [vmem:[%s4118_s4] ss:$0 sm:$0xff]  ;;  %v970_v8 = vadd.f32 %v3164_v40, %v760_v26  ;;  %v2548_v26 = vld [vmem:[%s4114_s0 + $0xc8] sm:$0xff] }
 0x3cb   :  { %v2198_v11 = vmax.f32 %v2168_v49, 0.0  ;;  %v1468_v32 = vpop.permute.xlu2 %1467  ;;  %v1151_v39 = vadd.f32 %v3196_v22, %v970_v8  ;;  %v2549_v8 = vld [vmem:[%s4114_s0 + $0xa0] sm:$0xff] }
 0x3cc   :  { %v1869_v52 = vpop.permute.xlu1 %1868  ;;  %v1535_v16 = vadd.f32 %v1468_v32, %v3805_v18 }
 0x3cd   :  { %v1931_v17 = vadd.f32 %v1869_v52, %v1721_v44  ;;  %v2218_v63 = vpack.c.bf16 %v2199_v35, %v2198_v11  ;;  %v1331_v35 = vadd.f32 %v3957_v2, %v1151_v39 }
 0x3cf   :  { %2498 = vmatmul.msk.bf16.gmra.mxu2 %vm263_vm2, %v2218_v63  ;;  %v2141_v31 = vadd.f32 %v2079_v55, %v1931_v17 }
 0x3d1   :  { %v1470_v28 = vpop.permute.xlu0 %1469  ;;  %v2175_v60 = vadd.f32 %v3963_v29, %v2141_v31 }
 0x3d2   :  { %v1536_v10 = vadd.f32 %v1470_v28, %v3809_v1  ;;  %v1152_v1 = vadd.f32 %v3212_v43, %v971_v14 }
 0x3d3   :  { %v1482_v36 = vpop.permute.xlu2 %1481  ;;  %v2205_v34 = vmax.f32 %v2175_v60, 0.0 }
 0x3d4   :  { %v2077_v47 = vpop.permute.xlu1 %2076 }
 0x3d5   :  { %v2140_v7 = vadd.f32 %v2077_v47, %v1930_v59 }
 0x3d7   :  { %v2174_v50 = vadd.f32 %v3963_v29, %v2140_v7 }
 0x3d9   :  { %v2204_v12 = vmax.f32 %v2174_v50, 0.0  ;;  %v1649_v15 = vpop.permute.xlu0 %1648 }
 0x3da   :  { %v1716_v45 = vadd.f32 %v1649_v15, %v1535_v16  ;;  %v2546_v16 = vld [vmem:[%s4114_s0 + $0x98] sm:$0xff] }
 0x3db   :  { %v2221_v19 = vpack.c.bf16 %v2205_v34, %v2204_v12  ;;  %v1661_v9 = vpop.permute.xlu2 %1660  ;;  %v2543_v34 = vld [vmem:[%s4114_s0 + $0x80] sm:$0xff] }
 0x3dc   :  { %v1272_v51 = vpop.permute.xlu1 %1271 }
 0x3dd   :  { %2501 = vmatmul.msk.bf16.gmra.mxu3 %vm263_vm2, %v2221_v19  ;;  %v1332_v56 = vadd.f32 %v1272_v51, %v1152_v1  ;;  %v2547_v1 = vld [vmem:[%s4114_s0 + $0xc0] sm:$0xff] }
 0x3df   :  { %v1542_v38 = vadd.f32 %v1482_v36, %v1332_v56 }
 0x3e1   :  { %v1663_v54 = vpop.permute.xlu0 %1662 }
 0x3e2   :  { %v1723_v40 = vadd.f32 %v1663_v54, %v1542_v38 }
 0x3e3   :  { %v1861_v53 = vpop.permute.xlu2 %1860 }
 0x3e4   :  { %v1480_v20 = vpop.permute.xlu1 %1479 }
 0x3e5   :  { %v1541_v32 = vadd.f32 %v1480_v20, %v1331_v35 }
 0x3e7   :  { %v1722_v2 = vadd.f32 %v1661_v9, %v1541_v32 }
 0x3e9   :  { %v1871_v61 = vpop.permute.xlu0 %1870 }
 0x3ea   :  { %v1932_v60 = vadd.f32 %v1871_v61, %v1722_v2 }
 0x3eb   :  { %v2069_v37 = vpop.permute.xlu2 %2068 }
 0x3ec   :  { %v1651_v57 = vpop.permute.xlu1 %1650 }
 0x3ed   :  { %v1717_v46 = vadd.f32 %v1651_v57, %v1536_v10  ;;  %v2544_v10 = vld [vmem:[%s4114_s0 + $0x88] sm:$0xff] }
 0x3ef   :  { %v1927_v21 = vadd.f32 %v1861_v53, %v1717_v46  ;;  %v2545_v46 = vld [vmem:[%s4114_s0 + $0x90] sm:$0xff] }
 0x3f0   :  { %v2320_v33 = vpop.f32.mrf.mxu2 }
 0x3f1   :  { %v2321_v58 = vadd.f32 %v3816_v62, %v2320_v33  ;;  %v2071_v27 = vpop.permute.xlu0 %2070 }
 0x3f2   :  { %v2137_v30 = vadd.f32 %v2071_v27, %v1927_v21 }
 0x3f3   :  { %v2374_v55 = vadd.f32 %v2541_v41, %v2321_v58  ;;  %v2083_v28 = vpop.permute.xlu2 %2082 }
 0x3f4   :  { %v1859_v24 = vpop.permute.xlu1 %1858  ;;  %v2171_v43 = vadd.f32 %v3963_v29, %v2137_v30 }
 0x3f5   :  { %v2404_v18 = vmax.f32 %v2374_v55, 0.0  ;;  %v1926_v6 = vadd.f32 %v1859_v24, %v1716_v45 }
 0x3f6   :  { %v2201_v11 = vmax.f32 %v2171_v43, 0.0 }
 0x3f7   :  { %2434 = vst.msk [vmem:[%s4121_s8 + $0x70] sm:$0xff] %vm87_vm0, %v2404_v18  ;;  %v2136_v48 = vadd.f32 %v2069_v37, %v1926_v6 }
 0x3f8   :  { %v2322_v49 = vpop.f32.mrf.mxu2 }
 0x3f9   :  { %v2170_v4 = vadd.f32 %v3963_v29, %v2136_v48  ;;  %v2323_v44 = vadd.f32 %v3816_v62, %v2322_v49  ;;  %v2550_v49 = vld [vmem:[%s4114_s0 + $0xa8] sm:$0xff] }
 0x3fb   :  { %v2200_v52 = vmax.f32 %v2170_v4, 0.0  ;;  %v2375_v17 = vadd.f32 %v2542_v25, %v2323_v44 }
 0x3fc   :  { %v1873_v63 = vpop.permute.xlu1 %1872 }
 0x3fd   :  { %v2405_v3 = vmax.f32 %v2375_v17, 0.0  ;;  %v1933_v22 = vadd.f32 %v1873_v63, %v1723_v40  ;;  %v2219_v31 = vpack.c.bf16 %v2201_v11, %v2200_v52  ;;  %v2551_v40 = vld [vmem:[%s4114_s0 + $0xd0] sm:$0xff]  ;;  %v2552_v63 = vld [vmem:[%s4114_s0 + $0xd8] sm:$0xff] }
 0x3ff   :  { %2435 = vst.msk [vmem:[%s4121_s8 + $0x78] sm:$0xff] %vm87_vm0, %v2405_v3  ;;  %2499 = vmatmul.msk.bf16.gmra.mxu2 %vm263_vm2, %v2219_v31  ;;  %v2143_v59 = vadd.f32 %v2083_v28, %v1933_v22  ;;  %v2553_v28 = vld [vmem:[%s4114_s0 + $0xb0] sm:$0xff] }
 0x401   :  { %v2177_v36 = vadd.f32 %v3963_v29, %v2143_v59 }
 0x402   :  { %v2325_v47 = vpop.f32.mrf.mxu2 }
 0x403   :  { %v2326_v7 = vadd.f32 %v3816_v62, %v2325_v47  ;;  %v2207_v54 = vmax.f32 %v2177_v36, 0.0 }
 0x404   :  { %v2081_v50 = vpop.permute.xlu1 %2080 }
 0x405   :  { %v2376_v12 = vadd.f32 %v2543_v34, %v2326_v7  ;;  %v2142_v15 = vadd.f32 %v2081_v50, %v1932_v60  ;;  %v2554_v7 = vld [vmem:[%s4114_s0 + $0xb8] sm:$0xff] }
 0x407   :  { %v2406_v19 = vmax.f32 %v2376_v12, 0.0  ;;  %v2176_v51 = vadd.f32 %v3963_v29, %v2142_v15  ;;  %v2555_v15 = vld [vmem:[%s4114_s0 + $0xe0] sm:$0xff] }
 0x409   :  { %2436 = vst.msk [vmem:[%s4121_s8 + $0x80] sm:$0xff] %vm87_vm0, %v2406_v19  ;;  %v2206_v9 = vmax.f32 %v2176_v51, 0.0 }
 0x40a   :  { %v2327_v20 = vpop.f32.mrf.mxu2 }
 0x40b   :  { %v2328_v0 = vadd.f32 %v3816_v62, %v2327_v20  ;;  %v2222_v61 = vpack.c.bf16 %v2207_v54, %v2206_v9  ;;  %v2556_v20 = vld [vmem:[%s4114_s0 + $0xe8] sm:$0xff] }
 0x40d   :  { %v2377_v53 = vadd.f32 %v2544_v10, %v2328_v0  ;;  %2502 = vmatmul.msk.bf16.gmra.mxu3 %vm263_vm2, %v2222_v61 }
 0x40f   :  { %v2407_v57 = vmax.f32 %v2377_v53, 0.0 }
 0x411   :  { %2437 = vst.msk [vmem:[%s4121_s8 + $0x88] sm:$0xff] %vm87_vm0, %v2407_v57 }
 0x422   :  { %v2330_v29 = vpop.f32.mrf.mxu2 }
 0x423   :  { %v2331_v5 = vadd.f32 %v3816_v62, %v2330_v29 }
 0x425   :  { %v2378_v42 = vadd.f32 %v2545_v46, %v2331_v5 }
 0x427   :  { %v2408_v13 = vmax.f32 %v2378_v42, 0.0 }
 0x429   :  { %2438 = vst.msk [vmem:[%s4121_s8 + $0x90] sm:$0xff] %vm87_vm0, %v2408_v13 }
 0x42a   :  { %v2332_v33 = vpop.f32.mrf.mxu2 }
 0x42b   :  { %v2333_v14 = vadd.f32 %v3816_v62, %v2332_v33 }
 0x42d   :  { %v2379_v58 = vadd.f32 %v2546_v16, %v2333_v14 }
 0x42f   :  { %v2409_v21 = vmax.f32 %v2379_v58, 0.0 }
 0x430   :  { %v2345_v23 = vpop.f32.mrf.mxu3 }
 0x431   :  { %2439 = vst.msk [vmem:[%s4121_s8 + $0x98] sm:$0xff] %vm87_vm0, %v2409_v21  ;;  %v2346_v27 = vadd.f32 %v3816_v62, %v2345_v23 }
 0x433   :  { %v2384_v45 = vadd.f32 %v2547_v1, %v2346_v27 }
 0x435   :  { %v2414_v41 = vmax.f32 %v2384_v45, 0.0 }
 0x437   :  { %2444 = vst.msk [vmem:[%s4121_s8 + $0xc0] sm:$0xff] %vm87_vm0, %v2414_v41 }
 0x438   :  { %v2347_v55 = vpop.f32.mrf.mxu3 }
 0x439   :  { %v2348_v30 = vadd.f32 %v3816_v62, %v2347_v55 }
 0x43b   :  { %v2385_v24 = vadd.f32 %v2548_v26, %v2348_v30 }
 0x43d   :  { %v2415_v56 = vmax.f32 %v2385_v24, 0.0 }
 0x43f   :  { %2445 = vst.msk [vmem:[%s4121_s8 + $0xc8] sm:$0xff] %vm87_vm0, %v2415_v56 }
 0x452   :  { %v2335_v18 = vpop.f32.mrf.mxu2 }
 0x453   :  { %v2336_v6 = vadd.f32 %v3816_v62, %v2335_v18 }
 0x455   :  { %v2380_v37 = vadd.f32 %v2549_v8, %v2336_v6 }
 0x457   :  { %v2410_v43 = vmax.f32 %v2380_v37, 0.0 }
 0x459   :  { %2440 = vst.msk [vmem:[%s4121_s8 + $0xa0] sm:$0xff] %vm87_vm0, %v2410_v43 }
 0x45a   :  { %v2337_v48 = vpop.f32.mrf.mxu2 }
 0x45b   :  { %v2338_v39 = vadd.f32 %v3816_v62, %v2337_v48 }
 0x45d   :  { %v2381_v38 = vadd.f32 %v2550_v49, %v2338_v39 }
 0x45f   :  { %v2411_v4 = vmax.f32 %v2381_v38, 0.0 }
 0x460   :  { %v2350_v44 = vpop.f32.mrf.mxu3 }
 0x461   :  { %2441 = vst.msk [vmem:[%s4121_s8 + $0xa8] sm:$0xff] %vm87_vm0, %v2411_v4  ;;  %v2351_v35 = vadd.f32 %v3816_v62, %v2350_v44 }
 0x463   :  { %v2386_v11 = vadd.f32 %v2551_v40, %v2351_v35 }
 0x465   :  { %v2416_v52 = vmax.f32 %v2386_v11, 0.0 }
 0x467   :  { %2446 = vst.msk [vmem:[%s4121_s8 + $0xd0] sm:$0xff] %vm87_vm0, %v2416_v52 }
 0x468   :  { %v2352_v25 = vpop.f32.mrf.mxu3 }
 0x469   :  { %v2353_v17 = vadd.f32 %v3816_v62, %v2352_v25 }
 0x46b   :  { %v2387_v32 = vadd.f32 %v2552_v63, %v2353_v17 }
 0x46d   :  { %v2417_v3 = vmax.f32 %v2387_v32, 0.0 }
 0x46f   :  { %2447 = vst.msk [vmem:[%s4121_s8 + $0xd8] sm:$0xff] %vm87_vm0, %v2417_v3 }
 0x482   :  { %v2340_v22 = vpop.f32.mrf.mxu2 }
 0x483   :  { %v2341_v31 = vadd.f32 %v3816_v62, %v2340_v22 }
 0x485   :  { %v2382_v2 = vadd.f32 %v2553_v28, %v2341_v31 }
 0x487   :  { %v2412_v59 = vmax.f32 %v2382_v2, 0.0 }
 0x489   :  { %2442 = vst.msk [vmem:[%s4121_s8 + $0xb0] sm:$0xff] %vm87_vm0, %v2412_v59 }
 0x48a   :  { %v2342_v47 = vpop.f32.mrf.mxu2 }
 0x48b   :  { %v2343_v60 = vadd.f32 %v3816_v62, %v2342_v47 }
 0x48d   :  { %v2383_v50 = vadd.f32 %v2554_v7, %v2343_v60 }
 0x48f   :  { %v2413_v36 = vmax.f32 %v2383_v50, 0.0 }
 0x490   :  { %v2355_v34 = vpop.f32.mrf.mxu3 }
 0x491   :  { %2443 = vst.msk [vmem:[%s4121_s8 + $0xb8] sm:$0xff] %vm87_vm0, %v2413_v36  ;;  %v2356_v12 = vadd.f32 %v3816_v62, %v2355_v34 }
 0x493   :  { %v2388_v19 = vadd.f32 %v2555_v15, %v2356_v12 }
 0x495   :  { %v2418_v51 = vmax.f32 %v2388_v19, 0.0 }
 0x497   :  { %2448 = vst.msk [vmem:[%s4121_s8 + $0xe0] sm:$0xff] %vm87_vm0, %v2418_v51 }
 0x498   :  { %v2357_v54 = vpop.f32.mrf.mxu3 }
 0x499   :  { %v2358_v9 = vadd.f32 %v3816_v62, %v2357_v54 }
 0x49b   :  { %v2389_v0 = vadd.f32 %v2556_v20, %v2358_v9 }
 0x49d   :  { %v2419_v61 = vmax.f32 %v2389_v0, 0.0 }
 0x49f   :  { %2449 = vst.msk [vmem:[%s4121_s8 + $0xe8] sm:$0xff] %vm87_vm0, %v2419_v61 }

</bundles_post_ra>
